<compile_context>
chip_gen: v7x
topology: tpu7x:2x2x1
jax: 0.10.0
libtpu: 0.0.40
codegen_flags: <defaults>
</compile_context>

<pallas_src>
import functools
import numpy as np
import jax
import jax.numpy as jnp
from jax import lax
from jax.experimental import pallas as pl
from jax.experimental.pallas import tpu as pltpu

EPS = 1e-5          # nn.LayerNorm default


# ----------------------------- in-kernel math -------------------------------

def _layer_norm(x, w, b):
    # Fused single pass: sum and sum-of-squares together, var = E[x^2] - mu^2.
    d_inv = 1.0 / x.shape[-1]
    mu = jnp.sum(x, axis=-1, keepdims=True) * d_inv
    ms = jnp.sum(x * x, axis=-1, keepdims=True) * d_inv
    var = ms - mu * mu
    return (x - mu) * lax.rsqrt(var + EPS) * w + b


def _gelu(x):
    # tanh-approximate GELU: one EUP tanh per element (otherwise-idle slot).
    # TODO(synk): PyTorch nn.GELU default is erf-exact; tanh approx differs ~1e-3.
    c = 0.7978845608028654  # sqrt(2/pi)
    return 0.5 * x * (1.0 + jnp.tanh(c * (x + 0.044715 * x * x * x)))


# ------------------------------ fused kernel --------------------------------

def predictor_kernel(xc_ref, cpos_ref, ptok_ref,
                     embw_ref, embb_ref,
                     ln1w_ref, ln1b_ref, qkvw_ref, qkvb_ref, atw_ref, atb_ref,
                     ln2w_ref, ln2b_ref, fc1w_ref, fc1b_ref, fc2w_ref, fc2b_ref,
                     normw_ref, normb_ref, projw_ref, projb_ref,
                     o_ref, act_ref, *, num_heads, n_ctxt, n_tgt):
    """grid = (batch, depth); one batch element and one transformer block per step."""
    l = pl.program_id(1)                 # depth (layer) index
    H = num_heads
    D = act_ref.shape[-1]
    hd = D // H

    # -- layer 0: predictor_embed on context tokens + assemble full sequence --
    @pl.when(l == 0)
    def _():
        ctx = (jnp.dot(xc_ref[...], embw_ref[...],
                       preferred_element_type=jnp.float32)
               + embb_ref[...] + cpos_ref[...])                    # (n_ctxt, D)
        act_ref[pl.ds(0, n_ctxt), :] = ctx
        act_ref[pl.ds(n_ctxt, n_tgt), :] = ptok_ref[...]           # mask_token + pos

    x = act_ref[...]                                               # (N, D)

    # ---- Attention branch (pre-LN).  One full-width QKV matmul; attention
    #      scale already folded into the Q columns at pack time; per-head
    #      score/AV matmuls are intrinsic (hd lanes each); single full-width
    #      output projection (lane concat of head outputs). ----
    h = _layer_norm(x, ln1w_ref[...], ln1b_ref[...])
    qkv = (jnp.dot(h, qkvw_ref[...], preferred_element_type=jnp.float32)
           + qkvb_ref[...])                                        # (N, 3D)
    heads = []
    for i in range(H):
        q = qkv[:, i * hd:(i + 1) * hd]
        k = qkv[:, D + i * hd:D + (i + 1) * hd]
        v = qkv[:, 2 * D + i * hd:2 * D + (i + 1) * hd]
        s = jnp.einsum('qd,kd->qk', q, k, preferred_element_type=jnp.float32)
        s = s - jnp.max(s, axis=-1, keepdims=True)
        p = jnp.exp(s)
        p = p * pl.reciprocal(jnp.sum(p, axis=-1, keepdims=True), approx=True)
        heads.append(jnp.dot(p, v, preferred_element_type=jnp.float32))
    o = jnp.concatenate(heads, axis=-1)                            # (N, D) head concat
    x = x + (jnp.dot(o, atw_ref[...], preferred_element_type=jnp.float32)
             + atb_ref[...])
    # TODO(synk): attn_drop / proj_drop / drop_path are rate-0 (eval) -> identity.

    # ---- MLP branch (pre-LN) ----
    h2 = _layer_norm(x, ln2w_ref[...], ln2b_ref[...])
    h2 = (jnp.dot(h2, fc1w_ref[...], preferred_element_type=jnp.float32)
          + fc1b_ref[...])
    h2 = _gelu(h2)
    h2 = (jnp.dot(h2, fc2w_ref[...], preferred_element_type=jnp.float32)
          + fc2b_ref[...])
    x = x + h2
    act_ref[...] = x

    # ---- last layer: final LayerNorm + predictor_proj on TARGET rows only ----
    @pl.when(l == pl.num_programs(1) - 1)
    def _():
        tgt = _layer_norm(x[n_ctxt:, :], normw_ref[...], normb_ref[...])
        o_ref[...] = (jnp.dot(tgt, projw_ref[...],
                              preferred_element_type=jnp.float32)
                      + projb_ref[...]).astype(o_ref.dtype)


# ----------------------------- param packing --------------------------------

def pack_block_params(blocks, attn_scale):
    """Stack per-layer params along a leading depth axis (streamed by the grid)
    and fold the attention scale into the Q columns of qkv_w / qkv_b."""
    stack = lambda k: jnp.stack([b[k] for b in blocks], axis=0)
    qkv_w = stack('qkv_w')                                   # (depth, D, 3D)
    qkv_b = stack('qkv_b')                                   # (depth, 1, 3D)
    D = qkv_w.shape[1]
    colscale = jnp.concatenate([jnp.full((D,), attn_scale, jnp.float32),
                                jnp.ones((2 * D,), jnp.float32)])
    return {
        'ln1_w': stack('ln1_w'), 'ln1_b': stack('ln1_b'),    # (depth, 1, D)
        'qkv_w': qkv_w * colscale[None, None, :],
        'qkv_b': qkv_b * colscale[None, None, :],
        'proj_w': stack('proj_w'), 'proj_b': stack('proj_b'),
        'ln2_w': stack('ln2_w'), 'ln2_b': stack('ln2_b'),
        'fc1_w': stack('fc1_w'), 'fc1_b': stack('fc1_b'),
        'fc2_w': stack('fc2_w'), 'fc2_b': stack('fc2_b'),
    }


def fused_predictor(x_ctx, ctx_pos, pred_tok, params, *, num_heads):
    """x_ctx: (Bt, N_ctxt, E_in) raw context tokens; ctx_pos: (Bt, N_ctxt, D);
    pred_tok: (Bt, N_tgt, D).  Returns (Bt, N_tgt, E_out)."""
    Bt, n_ctxt, E_in = x_ctx.shape
    _, n_tgt, D = pred_tok.shape
    N = n_ctxt + n_tgt
    depth = len(params['blocks'])
    Dh = params['blocks'][0]['fc1_w'].shape[1]
    hd = D // num_heads
    scale = float(hd) ** -0.5
    pk = pack_block_params(params['blocks'], scale)

    # Lane-dense output: pad predictor_proj to a multiple of 128 out-columns.
    E_out = params['proj_w'].shape[1]
    E_pad = ((E_out + 127) // 128) * 128
    projw_pad = jnp.zeros((D, E_pad), jnp.float32).at[:, :E_out].set(params['proj_w'])
    projb_pad = jnp.zeros((1, E_pad), jnp.float32).at[:, :E_out].set(
        params['proj_b'].reshape(1, E_out))

    # TODO(synk): for v6e/v7x, casting weight matmul operands to bf16 (f32 accum)
    # would double MXU rate and halve VMEM pressure (~1e-2 numeric delta).

    args = (x_ctx.astype(jnp.float32), ctx_pos.astype(jnp.float32),
            pred_tok.astype(jnp.float32),
            params['embed_w'], params['embed_b'].reshape(1, D),
            pk['ln1_w'], pk['ln1_b'], pk['qkv_w'], pk['qkv_b'],
            pk['proj_w'], pk['proj_b'],
            pk['ln2_w'], pk['ln2_b'],
            pk['fc1_w'], pk['fc1_b'], pk['fc2_w'], pk['fc2_b'],
            params['norm_w'], params['norm_b'], projw_pad, projb_pad)

    perbatch = lambda b, l: (b, 0, 0)   # constant over depth -> fetched once per batch
    perlayer = lambda b, l: (l, 0, 0)   # streamed, one block's weights per grid step
    const2 = lambda b, l: (0, 0)

    in_specs = [
        pl.BlockSpec((None, n_ctxt, E_in), perbatch),   # x_ctx
        pl.BlockSpec((None, n_ctxt, D), perbatch),      # ctx_pos
        pl.BlockSpec((None, n_tgt, D), perbatch),       # pred_tok
        pl.BlockSpec((E_in, D), const2),                # embed_w
        pl.BlockSpec((1, D), const2),                   # embed_b
        pl.BlockSpec((None, 1, D), perlayer),           # ln1_w
        pl.BlockSpec((None, 1, D), perlayer),           # ln1_b
        pl.BlockSpec((None, D, 3 * D), perlayer),       # qkv_w
        pl.BlockSpec((None, 1, 3 * D), perlayer),       # qkv_b
        pl.BlockSpec((None, D, D), perlayer),           # attn proj_w
        pl.BlockSpec((None, 1, D), perlayer),           # attn proj_b
        pl.BlockSpec((None, 1, D), perlayer),           # ln2_w
        pl.BlockSpec((None, 1, D), perlayer),           # ln2_b
        pl.BlockSpec((None, D, Dh), perlayer),          # fc1_w
        pl.BlockSpec((None, 1, Dh), perlayer),          # fc1_b
        pl.BlockSpec((None, Dh, D), perlayer),          # fc2_w
        pl.BlockSpec((None, 1, D), perlayer),           # fc2_b
        pl.BlockSpec((1, D), const2),                   # final norm_w
        pl.BlockSpec((1, D), const2),                   # final norm_b
        pl.BlockSpec((D, E_pad), const2),               # predictor_proj w (padded)
        pl.BlockSpec((1, E_pad), const2),               # predictor_proj b (padded)
    ]
    out_spec = pl.BlockSpec((None, n_tgt, E_pad), perbatch)

    # Advisory cost estimate + VMEM budget.
    flops = 2 * Bt * (n_ctxt * E_in * D
                      + depth * (N * D * 3 * D + 2 * num_heads * N * N * hd
                                 + N * D * D + 2 * N * D * Dh)
                      + n_tgt * D * E_pad)
    transcendentals = Bt * depth * (num_heads * N * N + N * Dh)
    operand_bytes = sum(int(np.prod(a.shape)) * jnp.dtype(a.dtype).itemsize
                        for a in args)
    out_bytes = Bt * n_tgt * E_pad * 4
    cost = pl.CostEstimate(flops=int(flops), transcendentals=int(transcendentals),
                           bytes_accessed=int(operand_bytes + out_bytes))
    vmem_limit = int(min(48 * 1024 * 1024,
                         max(16 * 1024 * 1024, 6 * (operand_bytes + out_bytes))))

    kernel = functools.partial(predictor_kernel, num_heads=num_heads,
                               n_ctxt=n_ctxt, n_tgt=n_tgt)
    out = pl.pallas_call(
        kernel,
        out_shape=jax.ShapeDtypeStruct((Bt, n_tgt, E_pad), jnp.float32),
        grid_spec=pltpu.PrefetchScalarGridSpec(
            num_scalar_prefetch=0,
            grid=(Bt, depth),
            in_specs=in_specs,
            out_specs=out_spec,
            scratch_shapes=[pltpu.VMEM((N, D), jnp.float32)],
        ),
        compiler_params=pltpu.CompilerParams(
            dimension_semantics=("parallel", "arbitrary"),
            vmem_limit_bytes=vmem_limit),
        cost_estimate=cost,
    )(*args)
    return out[:, :, :E_out]


# ------------------------------ JAX glue -------------------------------------

def apply_masks(x, masks):
    # x: (B, N, D); masks: list of (B, K) int index arrays
    out = [jnp.take_along_axis(x, m[:, :, None], axis=1) for m in masks]
    return jnp.concatenate(out, axis=0)


def repeat_interleave_batch(x, B, repeat):
    N = x.shape[0] // B
    return jnp.concatenate([
        jnp.concatenate([x[i * B:(i + 1) * B] for _ in range(repeat)], axis=0)
        for i in range(N)], axis=0)


def get_grid(grid_size):
    grid_h = np.arange(grid_size[0], dtype=float)
    grid_w = np.arange(grid_size[1], dtype=float)
    grid = np.meshgrid(grid_w, grid_h)
    grid = np.stack(grid, axis=0)
    return grid.reshape([2, 1, grid_size[0], grid_size[1]])


def sincos_1d(embed_dim, pos):
    omega = np.arange(embed_dim // 2, dtype=float)
    omega /= embed_dim / 2.0
    omega = 1.0 / 10000 ** omega
    out = np.einsum('m,d->md', pos.reshape(-1), omega)
    return np.concatenate([np.sin(out), np.cos(out)], axis=1)


def init_params(key, embed_dim, pred_dim, depth, num_heads, mlp_ratio,
                in_chan, grid_size, init_std=0.02):
    Dh = int(pred_dim * mlp_ratio)
    keys = iter(jax.random.split(key, 8 + 6 * depth))
    tn = lambda shape: init_std * jax.random.truncated_normal(
        next(keys), -2.0, 2.0, shape, jnp.float32)

    params = {
        'embed_w': tn((embed_dim, pred_dim)),
        'embed_b': jnp.zeros((pred_dim,), jnp.float32),
        'mask_token': tn((1, 1, pred_dim)),
        'pe_proj_w': tn((in_chan, pred_dim // 2)),
        'pe_proj_b': jnp.zeros((pred_dim // 2,), jnp.float32),
        'emb_h': jnp.asarray(sincos_1d(pred_dim // 2, get_grid(grid_size)[0]),
                             jnp.float32),
        'norm_w': jnp.ones((1, pred_dim), jnp.float32),
        'norm_b': jnp.zeros((1, pred_dim), jnp.float32),
        'proj_w': tn((pred_dim, embed_dim)),
        'proj_b': jnp.zeros((embed_dim,), jnp.float32),
    }
    blocks = []
    for layer_id in range(depth):
        rescale = 1.0 / np.sqrt(2.0 * (layer_id + 1))   # fix_init_weight
        blocks.append({
            'ln1_w': jnp.ones((1, pred_dim), jnp.float32),
            'ln1_b': jnp.zeros((1, pred_dim), jnp.float32),
            'qkv_w': tn((pred_dim, 3 * pred_dim)),
            'qkv_b': jnp.zeros((1, 3 * pred_dim), jnp.float32),
            'proj_w': tn((pred_dim, pred_dim)) * rescale,
            'proj_b': jnp.zeros((1, pred_dim), jnp.float32),
            'ln2_w': jnp.ones((1, pred_dim), jnp.float32),
            'ln2_b': jnp.zeros((1, pred_dim), jnp.float32),
            'fc1_w': tn((pred_dim, Dh)),
            'fc1_b': jnp.zeros((1, Dh), jnp.float32),
            'fc2_w': tn((Dh, pred_dim)) * rescale,
            'fc2_b': jnp.zeros((1, pred_dim), jnp.float32),
        })
    params['blocks'] = blocks
    return params


def predictor_forward(params, x, masks_x, masks, gradient_pos_embed, *, num_heads):
    if not isinstance(masks_x, list):
        masks_x = [masks_x]
    if not isinstance(masks, list):
        masks = [masks]
    B = x.shape[0] // len(masks_x)
    D = params['embed_w'].shape[1]

    # -- GradTs_2dPE, add_w='mapping' path (tiny; plain JAX glue) --
    gp = gradient_pos_embed @ params['pe_proj_w'] + params['pe_proj_b']
    gp = jnp.squeeze(gp)
    emb_w = jnp.repeat(gp, 10, axis=0)
    emb_w = (emb_w - emb_w.min()) / (emb_w.max() - emb_w.min()) * 2.0 - 1.0
    pos_embed = jnp.concatenate([params['emb_h'], emb_w], axis=1)[None]   # (1, NP, D)

    x_pos_embed = jnp.tile(pos_embed, (B, 1, 1))
    ctx_pos = apply_masks(x_pos_embed, masks_x)            # (Bx, N_ctxt, D)

    pos_embs = apply_masks(jnp.tile(pos_embed, (B, 1, 1)), masks)
    pos_embs = repeat_interleave_batch(pos_embs, B, repeat=len(masks_x))
    pred_tok = jnp.broadcast_to(params['mask_token'], pos_embs.shape) + pos_embs

    # Tile raw context tokens / pos-embeds to the final batch (per-token embed
    # linear distributes over the tiling, so it runs inside the fused kernel
    # on context rows only).
    x_ctx = jnp.tile(x, (len(masks), 1, 1))                # (Bt, N_ctxt, E)
    ctx_pos = jnp.tile(ctx_pos, (len(masks), 1, 1))        # (Bt, N_ctxt, D)

    # Kernel emits target rows only -> output is already (Bt, N_tgt, E).
    return fused_predictor(x_ctx, ctx_pos, pred_tok, params, num_heads=num_heads)


# --------------------------------- main ---------------------------------------

if __name__ == "__main__":
    embed_dim = 64
    pred_dim = 32
    depth = 2
    num_heads = 4
    mlp_ratio = 4.0
    grid_size = (2, 10)                        # num_patches_2d
    num_patches = grid_size[0] * grid_size[1]  # 20
    in_chan = 3
    B = 2
    N_ctxt = 12
    N_tgt = 8

    key = jax.random.PRNGKey(0)
    k_param, k_grad, k_x, k_mx, k_mt = jax.random.split(key, 5)

    params = init_params(k_param, embed_dim, pred_dim, depth, num_heads,
                         mlp_ratio, in_chan, grid_size)

    gradient_pos_embed = jax.random.normal(
        k_grad, (1, num_patches // 10, in_chan), jnp.float32)
    x = jax.random.normal(k_x, (B, N_ctxt, embed_dim), jnp.float32)
    masks_x = jnp.stack([jax.random.permutation(k, num_patches)[:N_ctxt]
                         for k in jax.random.split(k_mx, B)]).astype(jnp.int32)
    masks = jnp.stack([jax.random.permutation(k, num_patches)[:N_tgt]
                       for k in jax.random.split(k_mt, B)]).astype(jnp.int32)

    fwd = jax.jit(functools.partial(predictor_forward, num_heads=num_heads))
    out = fwd(params, x, masks_x, masks, gradient_pos_embed)
    out = jax.block_until_ready(out)
    assert out.shape == (B, N_tgt, embed_dim), out.shape
    assert bool(jnp.all(jnp.isfinite(out)))
    print("KERNEL_OK")
</pallas_src>

<mosaic_0001>
module attributes {stable_mosaic.version = 11 : i64} {
  func.func @predictor_kernel(%arg0: i32, %arg1: i32, %arg2: memref<1x12x64xf32, #tpu.memory_space<vmem>>, %arg3: memref<1x12x32xf32, #tpu.memory_space<vmem>>, %arg4: memref<1x8x32xf32, #tpu.memory_space<vmem>>, %arg5: memref<64x32xf32, #tpu.memory_space<vmem>>, %arg6: memref<1x32xf32, #tpu.memory_space<vmem>>, %arg7: memref<1x1x32xf32, #tpu.memory_space<vmem>>, %arg8: memref<1x1x32xf32, #tpu.memory_space<vmem>>, %arg9: memref<1x32x96xf32, #tpu.memory_space<vmem>>, %arg10: memref<1x1x96xf32, #tpu.memory_space<vmem>>, %arg11: memref<1x32x32xf32, #tpu.memory_space<vmem>>, %arg12: memref<1x1x32xf32, #tpu.memory_space<vmem>>, %arg13: memref<1x1x32xf32, #tpu.memory_space<vmem>>, %arg14: memref<1x1x32xf32, #tpu.memory_space<vmem>>, %arg15: memref<1x32x128xf32, #tpu.memory_space<vmem>>, %arg16: memref<1x1x128xf32, #tpu.memory_space<vmem>>, %arg17: memref<1x128x32xf32, #tpu.memory_space<vmem>>, %arg18: memref<1x1x32xf32, #tpu.memory_space<vmem>>, %arg19: memref<1x32xf32, #tpu.memory_space<vmem>>, %arg20: memref<1x32xf32, #tpu.memory_space<vmem>>, %arg21: memref<32x128xf32, #tpu.memory_space<vmem>>, %arg22: memref<1x128xf32, #tpu.memory_space<vmem>>, %arg23: memref<1x8x128xf32, #tpu.memory_space<vmem>>, %arg24: memref<20x32xf32, #tpu.memory_space<vmem>>) attributes {dimension_semantics = [#tpu.dimension_semantics<parallel>, #tpu.dimension_semantics<arbitrary>], iteration_bounds = array<i64: 2, 2>, scalar_prefetch = 0 : i64, scratch_operands = 1 : i64, tpu.core_type = #tpu.core_type<tc>, window_params = [{transform_indices = @transform_0, window_bounds = array<i64: 1, 12, 64>}, {transform_indices = @transform_1, window_bounds = array<i64: 1, 12, 32>}, {transform_indices = @transform_2, window_bounds = array<i64: 1, 8, 32>}, {pipeline_mode = #tpu.pipeline_mode<synchronous>, transform_indices = @transform_3, window_bounds = array<i64: 64, 32>}, {pipeline_mode = #tpu.pipeline_mode<synchronous>, transform_indices = @transform_4, window_bounds = array<i64: 1, 32>}, {transform_indices = @transform_5, window_bounds = array<i64: 1, 1, 32>}, {transform_indices = @transform_6, window_bounds = array<i64: 1, 1, 32>}, {transform_indices = @transform_7, window_bounds = array<i64: 1, 32, 96>}, {transform_indices = @transform_8, window_bounds = array<i64: 1, 1, 96>}, {transform_indices = @transform_9, window_bounds = array<i64: 1, 32, 32>}, {transform_indices = @transform_10, window_bounds = array<i64: 1, 1, 32>}, {transform_indices = @transform_11, window_bounds = array<i64: 1, 1, 32>}, {transform_indices = @transform_12, window_bounds = array<i64: 1, 1, 32>}, {transform_indices = @transform_13, window_bounds = array<i64: 1, 32, 128>}, {transform_indices = @transform_14, window_bounds = array<i64: 1, 1, 128>}, {transform_indices = @transform_15, window_bounds = array<i64: 1, 128, 32>}, {transform_indices = @transform_16, window_bounds = array<i64: 1, 1, 32>}, {pipeline_mode = #tpu.pipeline_mode<synchronous>, transform_indices = @transform_17, window_bounds = array<i64: 1, 32>}, {pipeline_mode = #tpu.pipeline_mode<synchronous>, transform_indices = @transform_18, window_bounds = array<i64: 1, 32>}, {pipeline_mode = #tpu.pipeline_mode<synchronous>, transform_indices = @transform_19, window_bounds = array<i64: 32, 128>}, {pipeline_mode = #tpu.pipeline_mode<synchronous>, transform_indices = @transform_20, window_bounds = array<i64: 1, 128>}, {transform_indices = @transform_21, window_bounds = array<i64: 1, 8, 128>}]} {
    %c0_i32 = arith.constant 0 : i32
    %0 = arith.cmpi eq, %arg1, %c0_i32 : i32
    %1 = arith.extui %0 : i1 to i32
    %c0_i32_0 = arith.constant 0 : i32
    %2 = arith.cmpi ne, %1, %c0_i32_0 : i32
    scf.if %2 {
      %c0_74 = arith.constant 0 : index
      %c0_75 = arith.constant 0 : index
      %c0_76 = arith.constant 0 : index
      %164 = vector.load %arg2[%c0_74, %c0_75, %c0_76] : memref<1x12x64xf32, #tpu.memory_space<vmem>>, vector<1x12x64xf32>
      %165 = vector.shape_cast %164 : vector<1x12x64xf32> to vector<12x64xf32>
      %c0_77 = arith.constant 0 : index
      %c0_78 = arith.constant 0 : index
      %166 = vector.load %arg5[%c0_77, %c0_78] : memref<64x32xf32, #tpu.memory_space<vmem>>, vector<64x32xf32>
      %cst_79 = arith.constant dense<0.000000e+00> : vector<12x32xf32>
      %167 = tpu.matmul %165, %166, %cst_79 {dimension_numbers = #tpu.dot_dimension_numbers<[1], [0], [0], [1], [0, 0, 1, 1], [], []>} : vector<12x64xf32>, vector<64x32xf32>, vector<12x32xf32> -> vector<12x32xf32>
      %c0_80 = arith.constant 0 : index
      %c0_81 = arith.constant 0 : index
      %168 = vector.load %arg6[%c0_80, %c0_81] : memref<1x32xf32, #tpu.memory_space<vmem>>, vector<1x32xf32>
      %169 = vector.broadcast %168 : vector<1x32xf32> to vector<12x32xf32>
      %170 = arith.addf %167, %169 : vector<12x32xf32>
      %c0_82 = arith.constant 0 : index
      %c0_83 = arith.constant 0 : index
      %c0_84 = arith.constant 0 : index
      %171 = vector.load %arg3[%c0_82, %c0_83, %c0_84] : memref<1x12x32xf32, #tpu.memory_space<vmem>>, vector<1x12x32xf32>
      %172 = vector.shape_cast %171 : vector<1x12x32xf32> to vector<12x32xf32>
      %173 = arith.addf %170, %172 : vector<12x32xf32>
      %c0_85 = arith.constant 0 : index
      %c0_86 = arith.constant 0 : index
      %174 = vector.load %arg24[%c0_85, %c0_86] : memref<20x32xf32, #tpu.memory_space<vmem>>, vector<12x32xf32>
      tpu.vector_store %arg24[%c0_85, %c0_86], %173 {strides = array<i32>} : memref<20x32xf32, #tpu.memory_space<vmem>>, vector<12x32xf32>,
      %c0_87 = arith.constant 0 : index
      %c0_88 = arith.constant 0 : index
      %c0_89 = arith.constant 0 : index
      %175 = vector.load %arg4[%c0_87, %c0_88, %c0_89] : memref<1x8x32xf32, #tpu.memory_space<vmem>>, vector<1x8x32xf32>
      %176 = vector.shape_cast %175 : vector<1x8x32xf32> to vector<8x32xf32>
      %c12 = arith.constant 12 : index
      %c0_90 = arith.constant 0 : index
      %177 = vector.load %arg24[%c12, %c0_90] : memref<20x32xf32, #tpu.memory_space<vmem>>, vector<8x32xf32>
      tpu.vector_store %arg24[%c12, %c0_90], %176 {strides = array<i32>} : memref<20x32xf32, #tpu.memory_space<vmem>>, vector<8x32xf32>,
    } else {
    }
    %c0 = arith.constant 0 : index
    %c0_1 = arith.constant 0 : index
    %3 = vector.load %arg24[%c0, %c0_1] : memref<20x32xf32, #tpu.memory_space<vmem>>, vector<20x32xf32>
    %c0_2 = arith.constant 0 : index
    %c0_3 = arith.constant 0 : index
    %c0_4 = arith.constant 0 : index
    %4 = vector.load %arg7[%c0_2, %c0_3, %c0_4] : memref<1x1x32xf32, #tpu.memory_space<vmem>>, vector<1x1x32xf32>
    %5 = vector.shape_cast %4 : vector<1x1x32xf32> to vector<1x32xf32>
    %c0_5 = arith.constant 0 : index
    %c0_6 = arith.constant 0 : index
    %c0_7 = arith.constant 0 : index
    %6 = vector.load %arg8[%c0_5, %c0_6, %c0_7] : memref<1x1x32xf32, #tpu.memory_space<vmem>>, vector<1x1x32xf32>
    %7 = vector.shape_cast %6 : vector<1x1x32xf32> to vector<1x32xf32>
    %cst = arith.constant dense<0.000000e+00> : vector<20xf32>
    %8 = vector.multi_reduction <add>, %3, %cst [1] : vector<20x32xf32> to vector<20xf32>
    %9 = vector.shape_cast %8 : vector<20xf32> to vector<20x1xf32>
    %cst_8 = arith.constant 3.125000e-02 : f32
    %10 = vector.broadcast %cst_8 : f32 to vector<20x1xf32>
    %11 = arith.mulf %9, %10 : vector<20x1xf32>
    %12 = arith.mulf %3, %3 : vector<20x32xf32>
    %cst_9 = arith.constant dense<0.000000e+00> : vector<20xf32>
    %13 = vector.multi_reduction <add>, %12, %cst_9 [1] : vector<20x32xf32> to vector<20xf32>
    %14 = vector.shape_cast %13 : vector<20xf32> to vector<20x1xf32>
    %cst_10 = arith.constant 3.125000e-02 : f32
    %15 = vector.broadcast %cst_10 : f32 to vector<20x1xf32>
    %16 = arith.mulf %14, %15 : vector<20x1xf32>
    %17 = arith.mulf %11, %11 : vector<20x1xf32>
    %18 = arith.subf %16, %17 : vector<20x1xf32>
    %19 = vector.broadcast %11 : vector<20x1xf32> to vector<20x32xf32>
    %20 = arith.subf %3, %19 : vector<20x32xf32>
    %cst_11 = arith.constant 9.99999974E-6 : f32
    %21 = vector.broadcast %cst_11 : f32 to vector<20x1xf32>
    %22 = arith.addf %18, %21 : vector<20x1xf32>
    %23 = math.rsqrt %22 : vector<20x1xf32>
    %24 = vector.broadcast %23 : vector<20x1xf32> to vector<20x32xf32>
    %25 = arith.mulf %20, %24 : vector<20x32xf32>
    %26 = vector.broadcast %5 : vector<1x32xf32> to vector<20x32xf32>
    %27 = arith.mulf %25, %26 : vector<20x32xf32>
    %28 = vector.broadcast %7 : vector<1x32xf32> to vector<20x32xf32>
    %29 = arith.addf %27, %28 : vector<20x32xf32>
    %c0_12 = arith.constant 0 : index
    %c0_13 = arith.constant 0 : index
    %c0_14 = arith.constant 0 : index
    %30 = vector.load %arg9[%c0_12, %c0_13, %c0_14] : memref<1x32x96xf32, #tpu.memory_space<vmem>>, vector<1x32x96xf32>
    %31 = vector.shape_cast %30 : vector<1x32x96xf32> to vector<32x96xf32>
    %cst_15 = arith.constant dense<0.000000e+00> : vector<20x96xf32>
    %32 = tpu.matmul %29, %31, %cst_15 {dimension_numbers = #tpu.dot_dimension_numbers<[1], [0], [0], [1], [0, 0, 1, 1], [], []>} : vector<20x32xf32>, vector<32x96xf32>, vector<20x96xf32> -> vector<20x96xf32>
    %c0_16 = arith.constant 0 : index
    %c0_17 = arith.constant 0 : index
    %c0_18 = arith.constant 0 : index
    %33 = vector.load %arg10[%c0_16, %c0_17, %c0_18] : memref<1x1x96xf32, #tpu.memory_space<vmem>>, vector<1x1x96xf32>
    %34 = vector.shape_cast %33 : vector<1x1x96xf32> to vector<1x96xf32>
    %35 = vector.broadcast %34 : vector<1x96xf32> to vector<20x96xf32>
    %36 = arith.addf %32, %35 : vector<20x96xf32>
    %37 = vector.extract_strided_slice %36 {offsets = [0, 0], sizes = [20, 8], strides = [1, 1]} : vector<20x96xf32> to vector<20x8xf32>
    %38 = vector.extract_strided_slice %36 {offsets = [0, 32], sizes = [20, 8], strides = [1, 1]} : vector<20x96xf32> to vector<20x8xf32>
    %39 = vector.extract_strided_slice %36 {offsets = [0, 64], sizes = [20, 8], strides = [1, 1]} : vector<20x96xf32> to vector<20x8xf32>
    "tpu.trace_start"() <{level = 10 : i32, message = "qd,kd->qk"}> : () -> ()
    %cst_19 = arith.constant dense<0.000000e+00> : vector<20x20xf32>
    %40 = tpu.matmul %37, %38, %cst_19 {dimension_numbers = #tpu.dot_dimension_numbers<[1], [1], [0], [0], [0, 0, 1, 0], [], []>} : vector<20x8xf32>, vector<20x8xf32>, vector<20x20xf32> -> vector<20x20xf32>
    "tpu.trace_stop"() : () -> ()
    %cst_20 = arith.constant dense<0xFF800000> : vector<20xf32>
    %41 = vector.multi_reduction <maximumf>, %40, %cst_20 [1] : vector<20x20xf32> to vector<20xf32>
    %42 = vector.shape_cast %41 : vector<20xf32> to vector<20x1xf32>
    %43 = vector.broadcast %42 : vector<20x1xf32> to vector<20x20xf32>
    %44 = arith.subf %40, %43 : vector<20x20xf32>
    %45 = math.exp %44 : vector<20x20xf32>
    %cst_21 = arith.constant dense<0.000000e+00> : vector<20xf32>
    %46 = vector.multi_reduction <add>, %45, %cst_21 [1] : vector<20x20xf32> to vector<20xf32>
    %47 = vector.shape_cast %46 : vector<20xf32> to vector<20x1xf32>
    %48 = tpu.reciprocal %47 {approx = true} : vector<20x1xf32> -> vector<20x1xf32>
    %49 = vector.broadcast %48 : vector<20x1xf32> to vector<20x20xf32>
    %50 = arith.mulf %45, %49 : vector<20x20xf32>
    %cst_22 = arith.constant dense<0.000000e+00> : vector<20x8xf32>
    %51 = tpu.matmul %50, %39, %cst_22 {dimension_numbers = #tpu.dot_dimension_numbers<[1], [0], [0], [1], [0, 0, 1, 1], [], []>} : vector<20x20xf32>, vector<20x8xf32>, vector<20x8xf32> -> vector<20x8xf32>
    %52 = vector.extract_strided_slice %36 {offsets = [0, 8], sizes = [20, 8], strides = [1, 1]} : vector<20x96xf32> to vector<20x8xf32>
    %53 = vector.extract_strided_slice %36 {offsets = [0, 40], sizes = [20, 8], strides = [1, 1]} : vector<20x96xf32> to vector<20x8xf32>
    %54 = vector.extract_strided_slice %36 {offsets = [0, 72], sizes = [20, 8], strides = [1, 1]} : vector<20x96xf32> to vector<20x8xf32>
    "tpu.trace_start"() <{level = 10 : i32, message = "qd,kd->qk"}> : () -> ()
    %cst_23 = arith.constant dense<0.000000e+00> : vector<20x20xf32>
    %55 = tpu.matmul %52, %53, %cst_23 {dimension_numbers = #tpu.dot_dimension_numbers<[1], [1], [0], [0], [0, 0, 1, 0], [], []>} : vector<20x8xf32>, vector<20x8xf32>, vector<20x20xf32> -> vector<20x20xf32>
    "tpu.trace_stop"() : () -> ()
    %cst_24 = arith.constant dense<0xFF800000> : vector<20xf32>
    %56 = vector.multi_reduction <maximumf>, %55, %cst_24 [1] : vector<20x20xf32> to vector<20xf32>
    %57 = vector.shape_cast %56 : vector<20xf32> to vector<20x1xf32>
    %58 = vector.broadcast %57 : vector<20x1xf32> to vector<20x20xf32>
    %59 = arith.subf %55, %58 : vector<20x20xf32>
    %60 = math.exp %59 : vector<20x20xf32>
    %cst_25 = arith.constant dense<0.000000e+00> : vector<20xf32>
    %61 = vector.multi_reduction <add>, %60, %cst_25 [1] : vector<20x20xf32> to vector<20xf32>
    %62 = vector.shape_cast %61 : vector<20xf32> to vector<20x1xf32>
    %63 = tpu.reciprocal %62 {approx = true} : vector<20x1xf32> -> vector<20x1xf32>
    %64 = vector.broadcast %63 : vector<20x1xf32> to vector<20x20xf32>
    %65 = arith.mulf %60, %64 : vector<20x20xf32>
    %cst_26 = arith.constant dense<0.000000e+00> : vector<20x8xf32>
    %66 = tpu.matmul %65, %54, %cst_26 {dimension_numbers = #tpu.dot_dimension_numbers<[1], [0], [0], [1], [0, 0, 1, 1], [], []>} : vector<20x20xf32>, vector<20x8xf32>, vector<20x8xf32> -> vector<20x8xf32>
    %67 = vector.extract_strided_slice %36 {offsets = [0, 16], sizes = [20, 8], strides = [1, 1]} : vector<20x96xf32> to vector<20x8xf32>
    %68 = vector.extract_strided_slice %36 {offsets = [0, 48], sizes = [20, 8], strides = [1, 1]} : vector<20x96xf32> to vector<20x8xf32>
    %69 = vector.extract_strided_slice %36 {offsets = [0, 80], sizes = [20, 8], strides = [1, 1]} : vector<20x96xf32> to vector<20x8xf32>
    "tpu.trace_start"() <{level = 10 : i32, message = "qd,kd->qk"}> : () -> ()
    %cst_27 = arith.constant dense<0.000000e+00> : vector<20x20xf32>
    %70 = tpu.matmul %67, %68, %cst_27 {dimension_numbers = #tpu.dot_dimension_numbers<[1], [1], [0], [0], [0, 0, 1, 0], [], []>} : vector<20x8xf32>, vector<20x8xf32>, vector<20x20xf32> -> vector<20x20xf32>
    "tpu.trace_stop"() : () -> ()
    %cst_28 = arith.constant dense<0xFF800000> : vector<20xf32>
    %71 = vector.multi_reduction <maximumf>, %70, %cst_28 [1] : vector<20x20xf32> to vector<20xf32>
    %72 = vector.shape_cast %71 : vector<20xf32> to vector<20x1xf32>
    %73 = vector.broadcast %72 : vector<20x1xf32> to vector<20x20xf32>
    %74 = arith.subf %70, %73 : vector<20x20xf32>
    %75 = math.exp %74 : vector<20x20xf32>
    %cst_29 = arith.constant dense<0.000000e+00> : vector<20xf32>
    %76 = vector.multi_reduction <add>, %75, %cst_29 [1] : vector<20x20xf32> to vector<20xf32>
    %77 = vector.shape_cast %76 : vector<20xf32> to vector<20x1xf32>
    %78 = tpu.reciprocal %77 {approx = true} : vector<20x1xf32> -> vector<20x1xf32>
    %79 = vector.broadcast %78 : vector<20x1xf32> to vector<20x20xf32>
    %80 = arith.mulf %75, %79 : vector<20x20xf32>
    %cst_30 = arith.constant dense<0.000000e+00> : vector<20x8xf32>
    %81 = tpu.matmul %80, %69, %cst_30 {dimension_numbers = #tpu.dot_dimension_numbers<[1], [0], [0], [1], [0, 0, 1, 1], [], []>} : vector<20x20xf32>, vector<20x8xf32>, vector<20x8xf32> -> vector<20x8xf32>
    %82 = vector.extract_strided_slice %36 {offsets = [0, 24], sizes = [20, 8], strides = [1, 1]} : vector<20x96xf32> to vector<20x8xf32>
    %83 = vector.extract_strided_slice %36 {offsets = [0, 56], sizes = [20, 8], strides = [1, 1]} : vector<20x96xf32> to vector<20x8xf32>
    %84 = vector.extract_strided_slice %36 {offsets = [0, 88], sizes = [20, 8], strides = [1, 1]} : vector<20x96xf32> to vector<20x8xf32>
    "tpu.trace_start"() <{level = 10 : i32, message = "qd,kd->qk"}> : () -> ()
    %cst_31 = arith.constant dense<0.000000e+00> : vector<20x20xf32>
    %85 = tpu.matmul %82, %83, %cst_31 {dimension_numbers = #tpu.dot_dimension_numbers<[1], [1], [0], [0], [0, 0, 1, 0], [], []>} : vector<20x8xf32>, vector<20x8xf32>, vector<20x20xf32> -> vector<20x20xf32>
    "tpu.trace_stop"() : () -> ()
    %cst_32 = arith.constant dense<0xFF800000> : vector<20xf32>
    %86 = vector.multi_reduction <maximumf>, %85, %cst_32 [1] : vector<20x20xf32> to vector<20xf32>
    %87 = vector.shape_cast %86 : vector<20xf32> to vector<20x1xf32>
    %88 = vector.broadcast %87 : vector<20x1xf32> to vector<20x20xf32>
    %89 = arith.subf %85, %88 : vector<20x20xf32>
    %90 = math.exp %89 : vector<20x20xf32>
    %cst_33 = arith.constant dense<0.000000e+00> : vector<20xf32>
    %91 = vector.multi_reduction <add>, %90, %cst_33 [1] : vector<20x20xf32> to vector<20xf32>
    %92 = vector.shape_cast %91 : vector<20xf32> to vector<20x1xf32>
    %93 = tpu.reciprocal %92 {approx = true} : vector<20x1xf32> -> vector<20x1xf32>
    %94 = vector.broadcast %93 : vector<20x1xf32> to vector<20x20xf32>
    %95 = arith.mulf %90, %94 : vector<20x20xf32>
    %cst_34 = arith.constant dense<0.000000e+00> : vector<20x8xf32>
    %96 = tpu.matmul %95, %84, %cst_34 {dimension_numbers = #tpu.dot_dimension_numbers<[1], [0], [0], [1], [0, 0, 1, 1], [], []>} : vector<20x20xf32>, vector<20x8xf32>, vector<20x8xf32> -> vector<20x8xf32>
    %97 = tpu.concatenate %51, %66, %81, %96 in 1 : vector<20x8xf32>, vector<20x8xf32>, vector<20x8xf32>, vector<20x8xf32> -> vector<20x32xf32>
    %c0_35 = arith.constant 0 : index
    %c0_36 = arith.constant 0 : index
    %c0_37 = arith.constant 0 : index
    %98 = vector.load %arg11[%c0_35, %c0_36, %c0_37] : memref<1x32x32xf32, #tpu.memory_space<vmem>>, vector<1x32x32xf32>
    %99 = vector.shape_cast %98 : vector<1x32x32xf32> to vector<32x32xf32>
    %cst_38 = arith.constant dense<0.000000e+00> : vector<20x32xf32>
    %100 = tpu.matmul %97, %99, %cst_38 {dimension_numbers = #tpu.dot_dimension_numbers<[1], [0], [0], [1], [0, 0, 1, 1], [], []>} : vector<20x32xf32>, vector<32x32xf32>, vector<20x32xf32> -> vector<20x32xf32>
    %c0_39 = arith.constant 0 : index
    %c0_40 = arith.constant 0 : index
    %c0_41 = arith.constant 0 : index
    %101 = vector.load %arg12[%c0_39, %c0_40, %c0_41] : memref<1x1x32xf32, #tpu.memory_space<vmem>>, vector<1x1x32xf32>
    %102 = vector.shape_cast %101 : vector<1x1x32xf32> to vector<1x32xf32>
    %103 = vector.broadcast %102 : vector<1x32xf32> to vector<20x32xf32>
    %104 = arith.addf %100, %103 : vector<20x32xf32>
    %105 = arith.addf %3, %104 : vector<20x32xf32>
    %c0_42 = arith.constant 0 : index
    %c0_43 = arith.constant 0 : index
    %c0_44 = arith.constant 0 : index
    %106 = vector.load %arg13[%c0_42, %c0_43, %c0_44] : memref<1x1x32xf32, #tpu.memory_space<vmem>>, vector<1x1x32xf32>
    %107 = vector.shape_cast %106 : vector<1x1x32xf32> to vector<1x32xf32>
    %c0_45 = arith.constant 0 : index
    %c0_46 = arith.constant 0 : index
    %c0_47 = arith.constant 0 : index
    %108 = vector.load %arg14[%c0_45, %c0_46, %c0_47] : memref<1x1x32xf32, #tpu.memory_space<vmem>>, vector<1x1x32xf32>
    %109 = vector.shape_cast %108 : vector<1x1x32xf32> to vector<1x32xf32>
    %cst_48 = arith.constant dense<0.000000e+00> : vector<20xf32>
    %110 = vector.multi_reduction <add>, %105, %cst_48 [1] : vector<20x32xf32> to vector<20xf32>
    %111 = vector.shape_cast %110 : vector<20xf32> to vector<20x1xf32>
    %cst_49 = arith.constant 3.125000e-02 : f32
    %112 = vector.broadcast %cst_49 : f32 to vector<20x1xf32>
    %113 = arith.mulf %111, %112 : vector<20x1xf32>
    %114 = arith.mulf %105, %105 : vector<20x32xf32>
    %cst_50 = arith.constant dense<0.000000e+00> : vector<20xf32>
    %115 = vector.multi_reduction <add>, %114, %cst_50 [1] : vector<20x32xf32> to vector<20xf32>
    %116 = vector.shape_cast %115 : vector<20xf32> to vector<20x1xf32>
    %cst_51 = arith.constant 3.125000e-02 : f32
    %117 = vector.broadcast %cst_51 : f32 to vector<20x1xf32>
    %118 = arith.mulf %116, %117 : vector<20x1xf32>
    %119 = arith.mulf %113, %113 : vector<20x1xf32>
    %120 = arith.subf %118, %119 : vector<20x1xf32>
    %121 = vector.broadcast %113 : vector<20x1xf32> to vector<20x32xf32>
    %122 = arith.subf %105, %121 : vector<20x32xf32>
    %cst_52 = arith.constant 9.99999974E-6 : f32
    %123 = vector.broadcast %cst_52 : f32 to vector<20x1xf32>
    %124 = arith.addf %120, %123 : vector<20x1xf32>
    %125 = math.rsqrt %124 : vector<20x1xf32>
    %126 = vector.broadcast %125 : vector<20x1xf32> to vector<20x32xf32>
    %127 = arith.mulf %122, %126 : vector<20x32xf32>
    %128 = vector.broadcast %107 : vector<1x32xf32> to vector<20x32xf32>
    %129 = arith.mulf %127, %128 : vector<20x32xf32>
    %130 = vector.broadcast %109 : vector<1x32xf32> to vector<20x32xf32>
    %131 = arith.addf %129, %130 : vector<20x32xf32>
    %c0_53 = arith.constant 0 : index
    %c0_54 = arith.constant 0 : index
    %c0_55 = arith.constant 0 : index
    %132 = vector.load %arg15[%c0_53, %c0_54, %c0_55] : memref<1x32x128xf32, #tpu.memory_space<vmem>>, vector<1x32x128xf32>
    %133 = vector.shape_cast %132 : vector<1x32x128xf32> to vector<32x128xf32>
    %cst_56 = arith.constant dense<0.000000e+00> : vector<20x128xf32>
    %134 = tpu.matmul %131, %133, %cst_56 {dimension_numbers = #tpu.dot_dimension_numbers<[1], [0], [0], [1], [0, 0, 1, 1], [], []>} : vector<20x32xf32>, vector<32x128xf32>, vector<20x128xf32> -> vector<20x128xf32>
    %c0_57 = arith.constant 0 : index
    %c0_58 = arith.constant 0 : index
    %c0_59 = arith.constant 0 : index
    %135 = vector.load %arg16[%c0_57, %c0_58, %c0_59] : memref<1x1x128xf32, #tpu.memory_space<vmem>>, vector<1x1x128xf32>
    %136 = vector.shape_cast %135 : vector<1x1x128xf32> to vector<1x128xf32>
    %137 = vector.broadcast %136 : vector<1x128xf32> to vector<20x128xf32>
    %138 = arith.addf %134, %137 : vector<20x128xf32>
    %cst_60 = arith.constant 5.000000e-01 : f32
    %139 = vector.broadcast %cst_60 : f32 to vector<20x128xf32>
    %140 = arith.mulf %139, %138 : vector<20x128xf32>
    %cst_61 = arith.constant 4.471500e-02 : f32
    %141 = vector.broadcast %cst_61 : f32 to vector<20x128xf32>
    %142 = arith.mulf %141, %138 : vector<20x128xf32>
    %143 = arith.mulf %142, %138 : vector<20x128xf32>
    %144 = arith.mulf %143, %138 : vector<20x128xf32>
    %145 = arith.addf %138, %144 : vector<20x128xf32>
    %cst_62 = arith.constant 0.797884583 : f32
    %146 = vector.broadcast %cst_62 : f32 to vector<20x128xf32>
    %147 = arith.mulf %146, %145 : vector<20x128xf32>
    %148 = math.tanh %147 : vector<20x128xf32>
    %cst_63 = arith.constant 1.000000e+00 : f32
    %149 = vector.broadcast %cst_63 : f32 to vector<20x128xf32>
    %150 = arith.addf %149, %148 : vector<20x128xf32>
    %151 = arith.mulf %140, %150 : vector<20x128xf32>
    %c0_64 = arith.constant 0 : index
    %c0_65 = arith.constant 0 : index
    %c0_66 = arith.constant 0 : index
    %152 = vector.load %arg17[%c0_64, %c0_65, %c0_66] : memref<1x128x32xf32, #tpu.memory_space<vmem>>, vector<1x128x32xf32>
    %153 = vector.shape_cast %152 : vector<1x128x32xf32> to vector<128x32xf32>
    %cst_67 = arith.constant dense<0.000000e+00> : vector<20x32xf32>
    %154 = tpu.matmul %151, %153, %cst_67 {dimension_numbers = #tpu.dot_dimension_numbers<[1], [0], [0], [1], [0, 0, 1, 1], [], []>} : vector<20x128xf32>, vector<128x32xf32>, vector<20x32xf32> -> vector<20x32xf32>
    %c0_68 = arith.constant 0 : index
    %c0_69 = arith.constant 0 : index
    %c0_70 = arith.constant 0 : index
    %155 = vector.load %arg18[%c0_68, %c0_69, %c0_70] : memref<1x1x32xf32, #tpu.memory_space<vmem>>, vector<1x1x32xf32>
    %156 = vector.shape_cast %155 : vector<1x1x32xf32> to vector<1x32xf32>
    %157 = vector.broadcast %156 : vector<1x32xf32> to vector<20x32xf32>
    %158 = arith.addf %154, %157 : vector<20x32xf32>
    %159 = arith.addf %105, %158 : vector<20x32xf32>
    %c0_71 = arith.constant 0 : index
    %c0_72 = arith.constant 0 : index
    %160 = vector.load %arg24[%c0_71, %c0_72] : memref<20x32xf32, #tpu.memory_space<vmem>>, vector<20x32xf32>
    tpu.vector_store %arg24[%c0_71, %c0_72], %159 {strides = array<i32>} : memref<20x32xf32, #tpu.memory_space<vmem>>, vector<20x32xf32>,
    %c1_i32 = arith.constant 1 : i32
    %161 = arith.cmpi eq, %arg1, %c1_i32 : i32
    %162 = arith.extui %161 : i1 to i32
    %c0_i32_73 = arith.constant 0 : i32
    %163 = arith.cmpi ne, %162, %c0_i32_73 : i32
    scf.if %163 {
      %164 = vector.extract_strided_slice %159 {offsets = [12, 0], sizes = [8, 32], strides = [1, 1]} : vector<20x32xf32> to vector<8x32xf32>
      %c0_74 = arith.constant 0 : index
      %c0_75 = arith.constant 0 : index
      %165 = vector.load %arg19[%c0_74, %c0_75] : memref<1x32xf32, #tpu.memory_space<vmem>>, vector<1x32xf32>
      %c0_76 = arith.constant 0 : index
      %c0_77 = arith.constant 0 : index
      %166 = vector.load %arg20[%c0_76, %c0_77] : memref<1x32xf32, #tpu.memory_space<vmem>>, vector<1x32xf32>
      %cst_78 = arith.constant dense<0.000000e+00> : vector<8xf32>
      %167 = vector.multi_reduction <add>, %164, %cst_78 [1] : vector<8x32xf32> to vector<8xf32>
      %168 = vector.shape_cast %167 : vector<8xf32> to vector<8x1xf32>
      %cst_79 = arith.constant 3.125000e-02 : f32
      %169 = vector.broadcast %cst_79 : f32 to vector<8x1xf32>
      %170 = arith.mulf %168, %169 : vector<8x1xf32>
      %171 = arith.mulf %164, %164 : vector<8x32xf32>
      %cst_80 = arith.constant dense<0.000000e+00> : vector<8xf32>
      %172 = vector.multi_reduction <add>, %171, %cst_80 [1] : vector<8x32xf32> to vector<8xf32>
      %173 = vector.shape_cast %172 : vector<8xf32> to vector<8x1xf32>
      %cst_81 = arith.constant 3.125000e-02 : f32
      %174 = vector.broadcast %cst_81 : f32 to vector<8x1xf32>
      %175 = arith.mulf %173, %174 : vector<8x1xf32>
      %176 = arith.mulf %170, %170 : vector<8x1xf32>
      %177 = arith.subf %175, %176 : vector<8x1xf32>
      %178 = vector.broadcast %170 : vector<8x1xf32> to vector<8x32xf32>
      %179 = arith.subf %164, %178 : vector<8x32xf32>
      %cst_82 = arith.constant 9.99999974E-6 : f32
      %180 = vector.broadcast %cst_82 : f32 to vector<8x1xf32>
      %181 = arith.addf %177, %180 : vector<8x1xf32>
      %182 = math.rsqrt %181 : vector<8x1xf32>
      %183 = vector.broadcast %182 : vector<8x1xf32> to vector<8x32xf32>
      %184 = arith.mulf %179, %183 : vector<8x32xf32>
      %185 = vector.broadcast %165 : vector<1x32xf32> to vector<8x32xf32>
      %186 = arith.mulf %184, %185 : vector<8x32xf32>
      %187 = vector.broadcast %166 : vector<1x32xf32> to vector<8x32xf32>
      %188 = arith.addf %186, %187 : vector<8x32xf32>
      %c0_83 = arith.constant 0 : index
      %c0_84 = arith.constant 0 : index
      %189 = vector.load %arg21[%c0_83, %c0_84] : memref<32x128xf32, #tpu.memory_space<vmem>>, vector<32x128xf32>
      %cst_85 = arith.constant dense<0.000000e+00> : vector<8x128xf32>
      %190 = tpu.matmul %188, %189, %cst_85 {dimension_numbers = #tpu.dot_dimension_numbers<[1], [0], [0], [1], [0, 0, 1, 1], [], []>} : vector<8x32xf32>, vector<32x128xf32>, vector<8x128xf32> -> vector<8x128xf32>
      %c0_86 = arith.constant 0 : index
      %c0_87 = arith.constant 0 : index
      %191 = vector.load %arg22[%c0_86, %c0_87] : memref<1x128xf32, #tpu.memory_space<vmem>>, vector<1x128xf32>
      %192 = vector.broadcast %191 : vector<1x128xf32> to vector<8x128xf32>
      %193 = arith.addf %190, %192 : vector<8x128xf32>
      %c0_88 = arith.constant 0 : index
      %c0_89 = arith.constant 0 : index
      %c0_90 = arith.constant 0 : index
      %194 = vector.load %arg23[%c0_88, %c0_89, %c0_90] : memref<1x8x128xf32, #tpu.memory_space<vmem>>, vector<1x8x128xf32>
      %195 = vector.shape_cast %194 : vector<1x8x128xf32> to vector<8x128xf32>
      %196 = vector.shape_cast %193 : vector<8x128xf32> to vector<1x8x128xf32>
      tpu.vector_store %arg23[%c0_88, %c0_89, %c0_90], %196 {strides = array<i32>} : memref<1x8x128xf32, #tpu.memory_space<vmem>>, vector<1x8x128xf32>,
    } else {
    }
    return
  }
  func.func @transform_0(%arg0: i32, %arg1: i32) -> (i32, i32, i32) {
    %c0_i32 = arith.constant 0 : i32
    %c0_i32_0 = arith.constant 0 : i32
    %c0_i32_1 = arith.constant 0 : i32
    return %arg0, %c0_i32, %c0_i32_0 : i32, i32, i32
  }
  func.func @transform_1(%arg0: i32, %arg1: i32) -> (i32, i32, i32) {
    %c0_i32 = arith.constant 0 : i32
    %c0_i32_0 = arith.constant 0 : i32
    %c0_i32_1 = arith.constant 0 : i32
    return %arg0, %c0_i32, %c0_i32_0 : i32, i32, i32
  }
  func.func @transform_2(%arg0: i32, %arg1: i32) -> (i32, i32, i32) {
    %c0_i32 = arith.constant 0 : i32
    %c0_i32_0 = arith.constant 0 : i32
    %c0_i32_1 = arith.constant 0 : i32
    return %arg0, %c0_i32, %c0_i32_0 : i32, i32, i32
  }
  func.func @transform_3(%arg0: i32, %arg1: i32) -> (i32, i32) {
    %c0_i32 = arith.constant 0 : i32
    %c0_i32_0 = arith.constant 0 : i32
    %c0_i32_1 = arith.constant 0 : i32
    return %c0_i32, %c0_i32_0 : i32, i32
  }
  func.func @transform_4(%arg0: i32, %arg1: i32) -> (i32, i32) {
    %c0_i32 = arith.constant 0 : i32
    %c0_i32_0 = arith.constant 0 : i32
    %c0_i32_1 = arith.constant 0 : i32
    return %c0_i32, %c0_i32_0 : i32, i32
  }
  func.func @transform_5(%arg0: i32, %arg1: i32) -> (i32, i32, i32) {
    %c0_i32 = arith.constant 0 : i32
    %c0_i32_0 = arith.constant 0 : i32
    %c0_i32_1 = arith.constant 0 : i32
    return %arg1, %c0_i32, %c0_i32_0 : i32, i32, i32
  }
  func.func @transform_6(%arg0: i32, %arg1: i32) -> (i32, i32, i32) {
    %c0_i32 = arith.constant 0 : i32
    %c0_i32_0 = arith.constant 0 : i32
    %c0_i32_1 = arith.constant 0 : i32
    return %arg1, %c0_i32, %c0_i32_0 : i32, i32, i32
  }
  func.func @transform_7(%arg0: i32, %arg1: i32) -> (i32, i32, i32) {
    %c0_i32 = arith.constant 0 : i32
    %c0_i32_0 = arith.constant 0 : i32
    %c0_i32_1 = arith.constant 0 : i32
    return %arg1, %c0_i32, %c0_i32_0 : i32, i32, i32
  }
  func.func @transform_8(%arg0: i32, %arg1: i32) -> (i32, i32, i32) {
    %c0_i32 = arith.constant 0 : i32
    %c0_i32_0 = arith.constant 0 : i32
    %c0_i32_1 = arith.constant 0 : i32
    return %arg1, %c0_i32, %c0_i32_0 : i32, i32, i32
  }
  func.func @transform_9(%arg0: i32, %arg1: i32) -> (i32, i32, i32) {
    %c0_i32 = arith.constant 0 : i32
    %c0_i32_0 = arith.constant 0 : i32
    %c0_i32_1 = arith.constant 0 : i32
    return %arg1, %c0_i32, %c0_i32_0 : i32, i32, i32
  }
  func.func @transform_10(%arg0: i32, %arg1: i32) -> (i32, i32, i32) {
    %c0_i32 = arith.constant 0 : i32
    %c0_i32_0 = arith.constant 0 : i32
    %c0_i32_1 = arith.constant 0 : i32
    return %arg1, %c0_i32, %c0_i32_0 : i32, i32, i32
  }
  func.func @transform_11(%arg0: i32, %arg1: i32) -> (i32, i32, i32) {
    %c0_i32 = arith.constant 0 : i32
    %c0_i32_0 = arith.constant 0 : i32
    %c0_i32_1 = arith.constant 0 : i32
    return %arg1, %c0_i32, %c0_i32_0 : i32, i32, i32
  }
  func.func @transform_12(%arg0: i32, %arg1: i32) -> (i32, i32, i32) {
    %c0_i32 = arith.constant 0 : i32
    %c0_i32_0 = arith.constant 0 : i32
    %c0_i32_1 = arith.constant 0 : i32
    return %arg1, %c0_i32, %c0_i32_0 : i32, i32, i32
  }
  func.func @transform_13(%arg0: i32, %arg1: i32) -> (i32, i32, i32) {
    %c0_i32 = arith.constant 0 : i32
    %c0_i32_0 = arith.constant 0 : i32
    %c0_i32_1 = arith.constant 0 : i32
    return %arg1, %c0_i32, %c0_i32_0 : i32, i32, i32
  }
  func.func @transform_14(%arg0: i32, %arg1: i32) -> (i32, i32, i32) {
    %c0_i32 = arith.constant 0 : i32
    %c0_i32_0 = arith.constant 0 : i32
    %c0_i32_1 = arith.constant 0 : i32
    return %arg1, %c0_i32, %c0_i32_0 : i32, i32, i32
  }
  func.func @transform_15(%arg0: i32, %arg1: i32) -> (i32, i32, i32) {
    %c0_i32 = arith.constant 0 : i32
    %c0_i32_0 = arith.constant 0 : i32
    %c0_i32_1 = arith.constant 0 : i32
    return %arg1, %c0_i32, %c0_i32_0 : i32, i32, i32
  }
  func.func @transform_16(%arg0: i32, %arg1: i32) -> (i32, i32, i32) {
    %c0_i32 = arith.constant 0 : i32
    %c0_i32_0 = arith.constant 0 : i32
    %c0_i32_1 = arith.constant 0 : i32
    return %arg1, %c0_i32, %c0_i32_0 : i32, i32, i32
  }
  func.func @transform_17(%arg0: i32, %arg1: i32) -> (i32, i32) {
    %c0_i32 = arith.constant 0 : i32
    %c0_i32_0 = arith.constant 0 : i32
    %c0_i32_1 = arith.constant 0 : i32
    return %c0_i32, %c0_i32_0 : i32, i32
  }
  func.func @transform_18(%arg0: i32, %arg1: i32) -> (i32, i32) {
    %c0_i32 = arith.constant 0 : i32
    %c0_i32_0 = arith.constant 0 : i32
    %c0_i32_1 = arith.constant 0 : i32
    return %c0_i32, %c0_i32_0 : i32, i32
  }
  func.func @transform_19(%arg0: i32, %arg1: i32) -> (i32, i32) {
    %c0_i32 = arith.constant 0 : i32
    %c0_i32_0 = arith.constant 0 : i32
    %c0_i32_1 = arith.constant 0 : i32
    return %c0_i32, %c0_i32_0 : i32, i32
  }
  func.func @transform_20(%arg0: i32, %arg1: i32) -> (i32, i32) {
    %c0_i32 = arith.constant 0 : i32
    %c0_i32_0 = arith.constant 0 : i32
    %c0_i32_1 = arith.constant 0 : i32
    return %c0_i32, %c0_i32_0 : i32, i32
  }
  func.func @transform_21(%arg0: i32, %arg1: i32) -> (i32, i32, i32) {
    %c0_i32 = arith.constant 0 : i32
    %c0_i32_0 = arith.constant 0 : i32
    %c0_i32_1 = arith.constant 0 : i32
    return %arg0, %c0_i32, %c0_i32_0 : i32, i32, i32
  }
}

</mosaic_0001>

<bundles_post_ra>
// kernel: predictor_forward.1
= control target key start
LH: loop header
LB: loop body
LE: loop exit
PB: predicated region body
PF: predicated region fallthrough
CT: control target
= control target key end

     0   :  { %s4590_s0 = inlined_call_operand.vmem [shape: f32[2,12,64], index: 0, kind: input, shape index: {}]   ;;  %s4591_s1 = inlined_call_operand.vmem [shape: f32[2,12,32], index: 1, kind: input, shape index: {}]   ;;  %s4592_s2 = inlined_call_operand.vmem [shape: f32[2,8,32], index: 2, kind: input, shape index: {}]   ;;  %s4593_s3 = inlined_call_operand.vmem [shape: f32[64,32], index: 3, kind: input, shape index: {}]   ;;  %s4594_s4 = inlined_call_operand.vmem [shape: f32[1,32], index: 4, kind: input, shape index: {}]   ;;  %s4595_s5 = inlined_call_operand.vmem [shape: f32[2,1,32], index: 5, kind: input, shape index: {}]   ;;  %s4596_s6 = inlined_call_operand.vmem [shape: f32[2,1,32], index: 6, kind: input, shape index: {}]   ;;  %s4597_s7 = inlined_call_operand.vmem [shape: f32[2,32,96], index: 7, kind: input, shape index: {}]   ;;  %s4598_s8 = inlined_call_operand.vmem [shape: f32[2,1,96], index: 8, kind: input, shape index: {}]   ;;  %s4599_s9 = inlined_call_operand.vmem [shape: f32[2,32,32], index: 9, kind: input, shape index: {}]   ;;  %s4600_s10 = inlined_call_operand.vmem [shape: f32[2,1,32], index: 10, kind: input, shape index: {}]   ;;  %s4601_s11 = inlined_call_operand.vmem [shape: f32[2,1,32], index: 11, kind: input, shape index: {}]   ;;  %s4602_s12 = inlined_call_operand.vmem [shape: f32[2,1,32], index: 12, kind: input, shape index: {}]   ;;  %s4603_s13 = inlined_call_operand.vmem [shape: f32[2,32,128], index: 13, kind: input, shape index: {}]   ;;  %s4604_s14 = inlined_call_operand.vmem [shape: f32[2,1,128], index: 14, kind: input, shape index: {}]   ;;  %s4605_s15 = inlined_call_operand.vmem [shape: f32[2,128,32], index: 15, kind: input, shape index: {}]   ;;  %s4606_s16 = inlined_call_operand.vmem [shape: f32[2,1,32], index: 16, kind: input, shape index: {}]   ;;  %s4607_s17 = inlined_call_operand.vmem [shape: f32[1,32], index: 17, kind: input, shape index: {}]   ;;  %s4608_s18 = inlined_call_operand.vmem [shape: f32[1,32], index: 18, kind: input, shape index: {}]   ;;  %s4609_s19 = inlined_call_operand.vmem [shape: f32[32,128], index: 19, kind: input, shape index: {}]   ;;  %s4610_s20 = inlined_call_operand.vmem [shape: f32[1,128], index: 20, kind: input, shape index: {}]   ;;  %s4611_s21 = inlined_call_operand.hbm [shape: f32[2,8,128], index: 21, kind: output, shape index: {}]  }
   0x1   :  { %4630 = sst [smem:[#allocation20_spill]] %s4590_s0 }
   0x2   :  { %4631 = sst [smem:[#allocation21_spill]] %s4591_s1 }
   0x3   :  { %4632 = sst [smem:[#allocation22_spill]] %s4592_s2 }
   0x4   :  { %4633 = sst [smem:[#allocation23_spill]] %s4593_s3 }
   0x5   :  { %4634 = sst [smem:[#allocation24_spill]] %s4594_s4 }
   0x6   :  { %4635 = sst [smem:[#allocation25_spill]] %s4595_s5 }
   0x7   :  { %4636 = sst [smem:[#allocation26_spill]] %s4597_s7 }
   0x8   :  { %4637 = sst [smem:[#allocation27_spill]] %s4599_s9 }
   0x9   :  { %4638 = sst [smem:[#allocation28_spill]] %s4601_s11 }
   0xa   :  { %4639 = sst [smem:[#allocation29_spill]] %s4603_s13 }
   0xb   :  { %4640 = sst [smem:[#allocation30_spill]] %s4605_s15 }
   0xc   :  { %4641 = sst [smem:[#allocation31_spill]] %s4606_s16 }
   0xd   :  { %4642 = sst [smem:[#allocation32_spill]] %s4607_s17 }
   0xe   :  { %4643 = sst [smem:[#allocation33_spill]] %s4608_s18 }
   0xf   :  { %4644 = sst [smem:[#allocation34_spill]] %s4609_s19 }
  0x10   :  { %4645 = sst [smem:[#allocation35_spill]] %s4610_s20 }
  0x11   :  { %4646 = sst [smem:[#allocation36_spill]] %s4611_s21 }
  0x12   :  { %26 = vsyncpa [#allocation4], 0 }
  0x13   :  { %28 = vsyncpa [#allocation4 + $0x1], 0  ;;  %s3908_s2 = smov 0   ;;  %s3910_s25 = smov 0  }
  0x14   :  { %s3912_s26 = smov 0   ;;  %s3914_s27 = smov 0  }
  0x15   :  { %s3916_s3 = smov 0   ;;  %s3918_s28 = smov 0  }
  0x16   :  { %s3920_s29 = smov 0   ;;  %s3922_s0 = smov 0  }
  0x17 LB: > { %4647 = sst [smem:[#allocation6_spill]] %s3747_s2  ;;  %s2945_s4 = sadd.s32 4294967295, %s3775_s0   ;;  %s3775_s0 = sphi %s3922_s0, %s34_s0   ;;  %s3771_s29 = sphi %s3920_s29, %s4708_s29   ;;  %s3767_s28 = sphi %s3918_s28, %s4707_s28   ;;  %s3763_s3 = sphi %s3916_s3, %s4706_s3   ;;  %s3759_s27 = sphi %s3914_s27, %s4705_s27   ;;  %s3755_s26 = sphi %s3912_s26, %s4704_s26   ;;  %s3751_s25 = sphi %s3910_s25, %s4703_s25   ;;  %s3747_s2 = sphi %s3908_s2, %s4702_s2  }
  0x18   : > { %4648 = sst [smem:[#allocation7_spill]] %s3751_s25  ;;  %s2946_s30 = sadd.s32 4294967294, %s3775_s0  }
  0x19   : > { %4649 = sst [smem:[#allocation8_spill]] %s3755_s26  ;;  %s43_s5 = sadd.s32 1, %s3767_s28 }
  0x1a   : > { %4650 = sst [smem:[#allocation9_spill]] %s3759_s27  ;;  %p44_p0 = scmp.ge.s32.totalorder %s43_s5, 2 }
  0x1b   : > { %4651 = sst [smem:[#allocation10_spill]] %s3763_s3  ;;  %s46_s22 = sadd.s32 1, %s3771_s29 }
  0x1c   : > { %4652 = sst [smem:[#allocation11_spill]] %s3767_s28  ;;  %p579_p1 = scmp.ne.s32.totalorder %s3755_s26, %s3751_s25 }
  0x1d   : > { %4653 = sst [smem:[#allocation12_spill]] %s3771_s29  ;;  %p580_p2 = scmp.eq.s32.totalorder %s2945_s4, 3 }
  0x1e   : > { %4654 = sst [smem:[#allocation13_spill]] %s3775_s0  ;;  %s4710_s5 = smov (%p44_p0, %s43_s5), 0 }
  0x1f   : > { %4655 = sst [smem:[#allocation14_spill]] %s4710_s5  ;;  %s4712_s22 = smov (!%p44_p0, %s46_s22), %s3771_s29 }
  0x20   : > { %p3957_p3 = por %p580_p2, %p579_p1  ;;  %p585_p4 = scmp.ne.s32.totalorder %s3751_s25, %s3747_s2 }
  0x21   : > { %p48_p5 = scmp.ge.s32.totalorder %s4712_s22, 2  ;;  %p586_p6 = scmp.eq.s32.totalorder %s2946_s30, 3 }
  0x22   : > { %s4656_s23 = scalar_select %p3957_p3, 1, 0 }
  0x23   : > { %p2949_p7 = scmp.ge.s32.totalorder %s3775_s0, 1  ;;  %p725_p8 = scmp.lt.s32.totalorder %s3775_s0, 5 }
  0x24   : > { %4657 = sst [smem:[#allocation15_spill]] %s4656_s23  ;;  %s4714_s22 = smov (%p48_p5, %s4712_s22), 0 }
  0x25   : > { %4658 = sst [smem:[#allocation16_spill]] %s4714_s22  ;;  %p3967_p9 = por %p586_p6, %p585_p4 }
  0x26   : > { %p726_p10 = pnand %p2949_p7, %p725_p8  ;;  %s566_s24 = ssub.s32 %s3771_s29, %s4714_s22 }
  0x27   : > { %s4659_s1 = scalar_select %p3967_p9, 1, 0 }
  0x28   : > { %s569_s4 = sadd.s32 1, %s3755_s26  ;;  %p567_p11 = scmp.eq.s32.totalorder %s566_s24, 0 }
  0x29   : > { %4660 = sst [smem:[#allocation17_spill]] %s4659_s1  ;;  %729 = sbr.rel (%p726_p10) target bundleno = 3039 (0xbdf), region = 104 }
  0x2a   : > { %s3975_s5 = scalar_select %p567_p11, %s3755_s26, %s569_s4  }
  0x2c   : > { %4661 = sst [smem:[#allocation18_spill]] %s3975_s5 }
  0x30   : > { %s4618_s30 = sand.u32 1, %s3751_s25   ;;  %p838_p12 = scmp.lt.s32.totalorder %s3763_s3, 1 }
  0x31   : > { %s3981_s28 = sshll.u32 %s4618_s30, 3  ;;  %p852_p13 = scmp.lt.s32.totalorder %s3759_s27, 1 }
  0x32   : > { %s839_s1 = scalar_select %p838_p12, %s3763_s3, 1 }
  0x33   : > { %s3986_s2 = scalar_select %p852_p13, %s3759_s27, 1 }
  0x34   : > { %s3034_s24 = sshll.u32 %s839_s1, 4  ;;  %s2955_s4 = sshll.u32 %s839_s1, 3 }
  0x35   : > { %s4662_s5 = sld [smem:[#allocation20_spill]]  ;;  %s4664_s21 = sld [smem:[#allocation21_spill]] }
  0x36   : > { %s4665_s20 = sld [smem:[#allocation22_spill]]  ;;  %s3036_s22 = sshll.u32 %s3986_s2, 5 }
  0x37   : > { %s4667_s7 = sld [smem:[#allocation26_spill]]  ;;  %s4668_s9 = sld [smem:[#allocation27_spill]] }
  0x38   : > { %s4670_s13 = sld [smem:[#allocation29_spill]]  ;;  %s887_s25 = scalar_lea.vmem %s4604_s14, %s3986_s2 }
  0x39   : > { %s4671_s15 = sld [smem:[#allocation31_spill]]  ;;  %s4672_s29 = sld [smem:[#allocation30_spill]] }
  0x3a   : > { %s837_s16 = scalar_lea.vmem [#allocation3], %s3981_s28 }
  0x3b   : > { %s3991_s30 = scalar_lea.vmem %s4662_s5, %s3034_s24  ;;  %s3996_s23 = scalar_lea.vmem %s4664_s21, %s3034_s24 }
  0x3c   : > { %4663 = sst [smem:[#allocation19_spill]] %s3991_s30  ;;  %s4001_s18 = scalar_lea.vmem %s4665_s20, %s2955_s4 }
  0x3d   : > { %s4015_s21 = scalar_lea.vmem %s4667_s7, %s3036_s22  ;;  %s4024_s24 = scalar_lea.vmem %s4668_s9, %s3036_s22 }
  0x3e   : > { %s4041_s0 = scalar_lea.vmem %s4670_s13, %s3036_s22  ;;  %s3039_s7 = sshll.u32 %s3986_s2, 7 }
  0x3f   : > { %s895_s9 = scalar_lea.vmem %s4671_s15, %s3986_s2  ;;  %s4055_s11 = scalar_lea.vmem %s4672_s29, %s3039_s7 }
  0x40   : > { %s4673_s30 = sld [smem:[#allocation9_spill]] }
  0x46   : > { %p2964_p0 = scmp.ne.s32.totalorder %s4673_s30, 0 }
  0x47   : > { %s4674_s26 = sld [smem:[#allocation23_spill]] (!%p2964_p0)  ;;  %s4676_s13 = sld [smem:[#allocation19_spill]] (!%p2964_p0)  ;;  %vm917_vm0 = vcmask (!%p2964_p0), 523264   ;;  %vm1003_vm1 = vcmask (!%p2964_p0), 261120   ;;  %v1007_v14 = vld [vmem:[%s4001_s18] sm:$0xff] (!%p2964_p0)  ;;  %vm1005_vm2 = vcmask (!%p2964_p0), 257024  }
  0x48   : > { %899 = sbr.rel (%p2964_p0) target bundleno = 315 (0x13b), region = 108  ;;  %1008 = vst.msk [vmem:[#allocation2 + $0xc] sm:$0xff] (!%p2964_p0), %vm1003_vm1, %v1007_v14  ;;  %s4677_s15 = sld [smem:[#allocation24_spill]] (!%p2964_p0)  ;;  %v1000_v17 = vld [vmem:[%s3996_s23 + $0x8] sm:$0xf] (!%p2964_p0)  ;;  %v999_v20 = vld [vmem:[%s3996_s23] sm:$0xff] (!%p2964_p0) }
  0x4d   : > { %s4675_s5 = smov (!%p2964_p0), %s4674_s26  ;;  %v902_v0 = vld [vmem:[%s4674_s26] sm:$0xff] (!%p2964_p0)  ;;  %v901_v13 = vld [vmem:[%s4676_s13 + $0x8] sm:$0xf] (!%p2964_p0) }
  0x4e   : > { %v903_v1 = vld [vmem:[%s4675_s5 + $0x8] sm:$0xff] (!%p2964_p0)  ;;  %v904_v2 = vld [vmem:[%s4675_s5 + $0x10] sm:$0xff] (!%p2964_p0)  ;;  %v905_v4 = vld [vmem:[%s4675_s5 + $0x18] sm:$0xff] (!%p2964_p0) }
  0x4f   : > { %v3385_v3 = vpack.c.bf16 %v903_v1, %v902_v0  ;;  %v3389_v5 = vpack.c.bf16 %v905_v4, %v904_v2  ;;  %v906_v6 = vld [vmem:[%s4675_s5 + $0x20] sm:$0xff]  ;;  %v907_v7 = vld [vmem:[%s4675_s5 + $0x28] sm:$0xff]  ;;  %v908_v10 = vld [vmem:[%s4675_s5 + $0x30] sm:$0xff] }
  0x50   : > { %v900_v8 = vld [vmem:[%s4676_s13] sm:$0xff]  ;;  %v3393_v9 = vpack.c.bf16 %v907_v7, %v906_v6  ;;  %v909_v11 = vld [vmem:[%s4675_s5 + $0x38] sm:$0xff] }
  0x51   : > { %3386 = vmatprep.subr.bf16.mxu0 %v3385_v3  ;;  %3159 = vmatprep.mubr.msk.f32.mxu0 %vm917_vm0, %v900_v8  ;;  %v3397_v12 = vpack.c.bf16 %v909_v11, %v908_v10  ;;  %v2965_v15 = vld [vmem:[%s4677_s15] ss:$0 sm:$0xff] }
  0x52   : > { %3388 = vmatpush3.bf16.msra.mxu0 %v3385_v3 }
  0x53   : > { %3390 = vmatprep.subr.bf16.mxu0 %v3389_v5 }
  0x56   : > { %3392 = vmatpush3.bf16.msra.mxu0 %v3389_v5 }
  0x57   : > { %3394 = vmatprep.subr.bf16.mxu0 %v3393_v9 }
  0x5a   : > { %3396 = vmatpush3.bf16.msra.mxu0 %v3393_v9 }
  0x5b   : > { %3398 = vmatprep.subr.bf16.mxu0 %v3397_v12 }
  0x5e   : > { %3400 = vmatpush3.bf16.msra.mxu0 %v3397_v12 }
  0x61   : > { %3160 = vmatmul.mubr.msk.f32.vlgmr.msra.gmra.mrb[0].mxu0 %vm917_vm0, %v901_v13 }
 0x134   : > { %v3161_v16 = vpop.f32.mrb[0].mxu0 }
 0x135   : > { %v996_v18 = vadd.f32 %v3161_v16, %v2965_v15  ;;  %v990_v19 = vpop.f32.mrb[1].mxu0 }
 0x136   : > { %v991_v21 = vadd.f32 %v2965_v15, %v990_v19 }
 0x137   : > { %v1002_v22 = vadd.f32 %v1000_v17, %v996_v18 }
 0x138   : > { %v1001_v23 = vadd.f32 %v999_v20, %v991_v21 }
 0x139   : > { %1006 = vst.msk [vmem:[#allocation2 + $0x8] sm:$0xf] %vm1005_vm2, %v1002_v22 }
 0x13a   : > { %1004 = vst.msk [vmem:[#allocation2] sm:$0xff] %vm1003_vm1, %v1001_v23 }
 0x13b PF: > { %vm1014_vm3 = vcmask 261120   ;;  %v4097_v26 = vld [vmem:[#allocation2 + $0x10] sm:$0xf]  ;;  %vm1021_vm4 = vcmask 257024   ;;  %v1079_v36 = vld [vmem:[%s4015_s21] sm:$0xff]  ;;  %v1080_v37 = vld [vmem:[%s4015_s21 + $0x8] sm:$0xff]  ;;  %s4680_s19 = scalar_lea.vmem %s4596_s6, %s3986_s2  ;;  %s4681_s30 = scalar_lea.vmem %s4598_s8, %s3986_s2 }
 0x13c   : > { %v1030_v33 = vmul.f32 %v4097_v26, %v4097_v26  ;;  %v1022_v34 = vsel %vm1021_vm4, %v4097_v26, 0.0  ;;  %v1081_v38 = vld [vmem:[%s4015_s21 + $0x10] sm:$0xff]  ;;  %v3777_v39 = vmov 0.0|0.0   ;;  %v3402_v40 = vpack.c.bf16 %v1080_v37, %v1079_v36  ;;  %v1082_v41 = vld [vmem:[%s4015_s21 + $0x18] sm:$0xff]  ;;  %s4678_s23 = sld [smem:[#allocation25_spill]]  ;;  %s3780_s27 = smov 96  }
 0x13d   : > { %3401 = vmatprep.subr.bf16.mxu0 %v3777_v39  ;;  %vm3778_vm5 = vmmov 0   ;;  %v3779_v42 = vmov 0.0   ;;  %3414 = vmatprep.subr.bf16.mxu1 %v3777_v39  ;;  %v3405_v43 = vpack.c.bf16 %v1082_v41, %v1081_v38  ;;  %v2969_v8 = vld [vmem:[%s4680_s19] ss:$0 sm:$0xff]  ;;  %s3781_s22 = smov 80   ;;  %s3782_s26 = smov 88  }
 0x13e   : > { %v1037_v35 = vsel %vm1021_vm4, %v1030_v33, 0.0  ;;  %3170 = vmatprep.mubr.msk.f32.mxu0 %vm3778_vm5, %v3779_v42  ;;  %3215 = vmatprep.mubr.msk.f32.mxu1 %vm3778_vm5, %v3779_v42  ;;  %v2970_v20 = vld [vmem:[%s4681_s30] ss:$0 sm:$0xff]  ;;  %s3783_s20 = smov 120   ;;  %s3784_s3 = smov 112   ;;  %vm1188_vm6 = vcmask 64512  }
 0x13f   : > { %3403 = vmatpush3.bf16.msra.mxu0 %v3402_v40  ;;  %s3785_s17 = smov 72   ;;  %s3786_s15 = smov 104   ;;  %vm4170_vm7 = vmpackc.low %vm1188_vm6, %vm1188_vm6  ;;  %vm1281_vm8 = vcmask 162816   ;;  %vm1288_vm9 = vcmask 158720   ;;  %vm1333_vm10 = vcmask 1043456   ;;  %vm2163_vm11 = vcmask 130048  }
 0x140   : > { %v4093_v24 = vld [vmem:[#allocation2 + $0x8] sm:$0xff]  ;;  %3404 = vmatprep.subr.bf16.mxu0 %v3777_v39  ;;  %s3787_s13 = smov 64   ;;  %s3788_s18 = smov 56   ;;  %vm2167_vm12 = vcmask 195584  }
 0x141   : > { %v4095_v25 = vld [vmem:[#allocation2] sm:$0xff]  ;;  %v1018_v27 = vsel %vm1014_vm3, %v4093_v24, 0.0  ;;  %v1029_v29 = vmul.f32 %v4093_v24, %v4093_v24  ;;  %s3791_s7 = smov 8   ;;  %s3792_s29 = smov 16  }
 0x142   : > { %v1015_v28 = vsel %vm1014_vm3, %v4095_v25, 0.0  ;;  %v1028_v30 = vmul.f32 %v4095_v25, %v4095_v25  ;;  %1019 = vadd.xlane.f32.xlu1 %v1018_v27  ;;  %s4679_s21 = scalar_lea.vmem %s4678_s23, %s3986_s2  ;;  %s3789_s23 = smov 48  }
 0x143   : > { %1016 = vadd.xlane.f32.xlu0 %v1015_v28  ;;  %v1034_v31 = vsel %vm1014_vm3, %v1029_v29, 0.0  ;;  %3406 = vmatpush3.bf16.msra.mxu0 %v3405_v43  ;;  %v2968_v5 = vld [vmem:[%s4679_s21] ss:$0 sm:$0xff]  ;;  %s3790_s21 = smov 40   ;;  %s3793_s19 = smov 24  }
 0x144   : > { %v1031_v32 = vsel %vm1014_vm3, %v1028_v30, 0.0  ;;  %3407 = vmatprep.subr.bf16.mxu0 %v3777_v39  ;;  %s4684_s1 = scalar_lea.vmem %s4600_s10, %s3986_s2 }
 0x146   : > { %1035 = vadd.xlane.f32.xlu1 %v1034_v31 }
 0x147   : > { %1032 = vadd.xlane.f32.xlu0 %v1031_v32 }
 0x14a   : > { %1038 = vadd.xlane.f32.xlu1 %v1037_v35 }
 0x14b   : > { %1023 = vadd.xlane.f32.xlu0 %v1022_v34 }
 0x1cf   : > { %v1020_v44 = vpop.xlane.xlu1 %1019 }
 0x1d0   : > { %v1017_v45 = vpop.xlane.xlu0 %1016  ;;  %v1026_v46 = vmul.f32 0.03125, %v1020_v44 }
 0x1d1   : > { %v1025_v47 = vmul.f32 0.03125, %v1017_v45 }
 0x1d2   : > { %v1044_v48 = vmul.f32 %v1026_v46, %v1026_v46  ;;  %v1050_v2 = vsub.f32 %v4093_v24, %v1026_v46 }
 0x1d3   : > { %v1036_v49 = vpop.xlane.xlu1 %1035  ;;  %v1043_v51 = vmul.f32 %v1025_v47, %v1025_v47  ;;  %v1049_v3 = vsub.f32 %v4095_v25, %v1025_v47 }
 0x1d4   : > { %v1033_v50 = vpop.xlane.xlu0 %1032  ;;  %v1041_v52 = vmul.f32 0.03125, %v1036_v49 }
 0x1d5   : > { %v1040_v53 = vmul.f32 0.03125, %v1033_v50 }
 0x1d6   : > { %v1047_v54 = vsub.f32 %v1041_v52, %v1044_v48 }
 0x1d7   : > { %v1046_v55 = vsub.f32 %v1040_v53, %v1043_v51  ;;  %v1039_v57 = vpop.xlane.xlu1 %1038 }
 0x1d8   : > { %v1024_v56 = vpop.xlane.xlu0 %1023  ;;  %v1053_v58 = vadd.f32 1e-05, %v1047_v54  ;;  %v1042_v61 = vmul.f32 0.03125, %v1039_v57 }
 0x1d9   : > { %v1052_v59 = vadd.f32 1e-05, %v1046_v55  ;;  %v1027_v60 = vmul.f32 0.03125, %v1024_v56 }
 0x1da   : > { %3608 = vrsqrt.f32 %v1053_v58 }
 0x1db   : > { %v1045_v62 = vmul.f32 %v1027_v60, %v1027_v60  ;;  %3610 = vrsqrt.f32 %v1052_v59  ;;  %v1051_v10 = vsub.f32 %v4097_v26, %v1027_v60 }
 0x1dd   : > { %v1048_v63 = vsub.f32 %v1042_v61, %v1045_v62 }
 0x1df   : > { %v1054_v0 = vadd.f32 1e-05, %v1048_v63 }
 0x1e1   : > { %3612 = vrsqrt.f32 %v1054_v0 }
 0x1e4   : > { %v3609_v1 = vpop.eup %3608 }
 0x1e5   : > { %v3611_v4 = vpop.eup %3610  ;;  %v1059_v7 = vmul.f32 %v3609_v1, %v1050_v2 }
 0x1e6   : > { %v1058_v6 = vmul.f32 %v3611_v4, %v1049_v3 }
 0x1e7   : > { %v1068_v13 = vmul.f32 %v2968_v5, %v1059_v7 }
 0x1e8   : > { %v1067_v9 = vmul.f32 %v2968_v5, %v1058_v6 }
 0x1e9   : > { %v1077_v15 = vadd.f32 %v2969_v8, %v1068_v13 }
 0x1ea   : > { %v1076_v12 = vadd.f32 %v2969_v8, %v1067_v9 }
 0x1eb   : > { %v3613_v11 = vpop.eup %3612 }
 0x1ec   : > { %v1060_v14 = vmul.f32 %v3613_v11, %v1051_v10  ;;  %3171 = vmatmul.mubr.msk.f32.vlgmr.msra.gmra.mrb[0].mxu0 %vm1014_vm3, %v1076_v12 }
 0x1ed   : > { %3173 = vmatprep.mubr.msk.f32.mxu0 %vm3778_vm5, %v3779_v42 }
 0x1ee   : > { %v1069_v16 = vmul.f32 %v2968_v5, %v1060_v14 }
 0x1f0   : > { %3174 = vmatmul.mubr.msk.f32.gmra.mrb[2].mxu0 %vm1014_vm3, %v1077_v15  ;;  %v1078_v17 = vadd.f32 %v2969_v8, %v1069_v16 }
 0x1f1   : > { %3176 = vmatprep.mubr.msk.f32.mxu0 %vm3778_vm5, %v3779_v42 }
 0x1f4   : > { %3177 = vmatmul.mubr.msk.f32.gmra.mrb[4].mxu0 %vm1014_vm3, %v1078_v17 }
 0x1f5   : > { %3185 = vmatprep.mubr.msk.f32.mxu0 %vm3778_vm5, %v3779_v42 }
 0x2bf   : > { %v1165_v18 = vpop.f32.mrb[0].mxu0 }
 0x2c0   : > { %v3172_v19 = vpop.f32.mrb[1].mxu0  ;;  %v1166_v22 = vadd.f32 %v2970_v20, %v1165_v18 }
 0x2c3   : > { %v1170_v21 = vpop.f32.mrb[2].mxu0 }
 0x2c4   : > { %v1171_v23 = vadd.f32 %v2970_v20, %v1170_v21  ;;  %v3175_v24 = vpop.f32.mrb[3].mxu0 }
 0x2c6   : > { %v4153_v25 = vpack.i.bf16 %v1171_v23, %v1166_v22 }
 0x2c7   : > { %v1175_v26 = vpop.f32.mrb[4].mxu0 }
 0x2c8   : > { %v4155_v27 = vadd.f32 %v2970_v20, %v1175_v26  ;;  %3569 = vrot.lane.b32.xlu0 %v4153_v25, %s3780_s27  ;;  %v3178_v28 = vpop.f32.mrb[5].mxu0 }
 0x2ca   : > { %1186 = vrot.lane.b32.xlu1 %v4155_v27, %s3780_s27  ;;  %s4685_s27 = sld [smem:[#allocation28_spill]] }
 0x2cc   : > { %3579 = vrot.lane.b32.xlu0 %v4153_v25, %s3781_s22 }
 0x2ce   : > { %3574 = vrot.lane.b32.xlu1 %v4153_v25, %s3782_s26 }
 0x2d0   : > { %1418 = vrot.lane.b32.xlu0 %v1171_v23, %s3783_s20 }
 0x2d2   : > { %1426 = vrot.lane.b32.xlu1 %v4155_v27, %s3782_s26 }
 0x2d4   : > { %1662 = vrot.lane.b32.xlu0 %v4155_v27, %s3781_s22  ;;  %s4686_s22 = scalar_lea.vmem %s4685_s27, %s3986_s2 }
 0x2d6   : > { %1416 = vrot.lane.b32.xlu1 %v1166_v22, %s3783_s20 }
 0x2d8   : > { %1652 = vrot.lane.b32.xlu0 %v1166_v22, %s3784_s3 }
 0x2da   : > { %1420 = vrot.lane.b32.xlu1 %v4155_v27, %s3783_s20 }
 0x2dc   : > { %1656 = vrot.lane.b32.xlu0 %v4155_v27, %s3784_s3 }
 0x2de   : > { %3584 = vrot.lane.b32.xlu1 %v4153_v25, %s3785_s17 }
 0x2e0   : > { %1888 = vrot.lane.b32.xlu0 %v1166_v22, %s3786_s15 }
 0x2e2   : > { %1654 = vrot.lane.b32.xlu1 %v1171_v23, %s3784_s3  ;;  %s4687_s3 = scalar_lea.vmem %s4602_s12, %s3986_s2 }
 0x2e4   : > { %1892 = vrot.lane.b32.xlu0 %v4155_v27, %s3786_s15 }
 0x2e6   : > { %1898 = vrot.lane.b32.xlu1 %v4155_v27, %s3785_s17 }
 0x2ea   : > { %1890 = vrot.lane.b32.xlu1 %v1171_v23, %s3786_s15 }
 0x33a   : > { %v3570_v29 = vpop.permute.xlu0 %3569 }
 0x33b   : > { %v3572_v30 = vunpack.i.h.bf16 %v3570_v29  ;;  %v3571_v31 = vunpack.i.l.bf16 %v3570_v29 }
 0x33c   : > { %v1187_v32 = vpop.permute.xlu1 %1186 }
 0x33d   : > { %v3408_v34 = vpack.c.bf16 %v3572_v30, %v3571_v31 }
 0x33e   : > { %v3580_v41 = vpop.permute.xlu0 %3579 }
 0x33f   : > { %3410 = vmatpush3.bf16.xpose.msk.msra.mxu0 %vm4170_vm7, %v3408_v34  ;;  %v3582_v44 = vunpack.i.h.bf16 %v3580_v41  ;;  %v3581_v45 = vunpack.i.l.bf16 %v3580_v41 }
 0x340   : > { %v3575_v35 = vpop.permute.xlu1 %3574  ;;  %3183 = vmatprep.subr.mxu0 %v3779_v42 }
 0x341   : > { %v3577_v36 = vunpack.i.h.bf16 %v3575_v35  ;;  %v3576_v37 = vunpack.i.l.bf16 %v3575_v35  ;;  %v3422_v47 = vpack.c.bf16 %v3582_v44, %v3581_v45 }
 0x342   : > { %v1419_v48 = vpop.permute.xlu0 %1418 }
 0x343   : > { %v3415_v38 = vpack.c.bf16 %v3577_v36, %v3576_v37 }
 0x344   : > { %v1427_v40 = vpop.permute.xlu1 %1426 }
 0x345   : > { %3417 = vmatpush3.bf16.xpose.msk.msra.mxu1 %vm4170_vm7, %v3415_v38 }
 0x346   : > { %3213 = vmatprep.subr.mxu1 %v3779_v42  ;;  %v1663_v50 = vpop.permute.xlu0 %1662 }
 0x347   : > { %3184 = vmatpush3.xpose.msk.msra.mxu0 %vm1188_vm6, %v1187_v32 }
 0x348   : > { %v1417_v43 = vpop.permute.xlu1 %1416  ;;  %3411 = vmatprep.subr.bf16.mxu0 %v3777_v39 }
 0x34a   : > { %3186 = vmatmul.mubr.msk.f32.vlgmr.msra.gmra.mrb[6].mxu0 %vm1188_vm6, %v1166_v22  ;;  %v1653_v53 = vpop.permute.xlu0 %1652 }
 0x34b   : > { %3188 = vmatprep.mubr.msk.f32.mxu0 %vm3778_vm5, %v3779_v42 }
 0x34c   : > { %v1421_v46 = vpop.permute.xlu1 %1420 }
 0x34d   : > { %3214 = vmatpush3.xpose.msk.msra.mxu1 %vm1188_vm6, %v1427_v40 }
 0x34e   : > { %3189 = vmatmul.mubr.msk.f32.gmra.mrb[8].mxu0 %vm1188_vm6, %v1171_v23  ;;  %3421 = vmatprep.subr.bf16.mxu1 %v3777_v39  ;;  %v1657_v56 = vpop.permute.xlu0 %1656 }
 0x34f   : > { %3191 = vmatprep.mubr.msk.f32.mxu0 %vm3778_vm5, %v3779_v42 }
 0x350   : > { %3216 = vmatmul.mubr.msk.f32.vlgmr.msra.gmra.mrb[0].mxu1 %vm1188_vm6, %v1417_v43  ;;  %v3585_v49 = vpop.permute.xlu1 %3584 }
 0x351   : > { %3424 = vmatpush3.bf16.xpose.msk.msra.mxu1 %vm4170_vm7, %v3422_v47  ;;  %3218 = vmatprep.mubr.msk.f32.mxu1 %vm3778_vm5, %v3779_v42  ;;  %v3587_v51 = vunpack.i.h.bf16 %v3585_v49  ;;  %v3586_v52 = vunpack.i.l.bf16 %v3585_v49 }
 0x352   : > { %3192 = vmatmul.mubr.msk.f32.gmra.mrb[10].mxu0 %vm1188_vm6, %v4155_v27  ;;  %3243 = vmatprep.subr.mxu1 %v3779_v42  ;;  %v1889_v58 = vpop.permute.xlu0 %1888 }
 0x353   : > { %3200 = vmatprep.mubr.msk.f32.mxu0 %vm3778_vm5, %v3779_v42  ;;  %v3429_v54 = vpack.c.bf16 %v3587_v51, %v3586_v52 }
 0x354   : > { %3219 = vmatmul.mubr.msk.f32.gmra.mrb[2].mxu1 %vm1188_vm6, %v1419_v48  ;;  %v1655_v55 = vpop.permute.xlu1 %1654 }
 0x355   : > { %3221 = vmatprep.mubr.msk.f32.mxu1 %vm3778_vm5, %v3779_v42 }
 0x356   : > { %v1893_v60 = vpop.permute.xlu0 %1892 }
 0x358   : > { %3222 = vmatmul.mubr.msk.f32.gmra.mrb[4].mxu1 %vm1188_vm6, %v1421_v46  ;;  %v1899_v57 = vpop.permute.xlu1 %1898 }
 0x359   : > { %3244 = vmatpush3.xpose.msk.msra.mxu1 %vm1188_vm6, %v1663_v50  ;;  %3245 = vmatprep.mubr.msk.f32.mxu1 %vm3778_vm5, %v3779_v42 }
 0x35a   : > { %3428 = vmatprep.subr.bf16.mxu1 %v3777_v39 }
 0x35c   : > { %3246 = vmatmul.mubr.msk.f32.vlgmr.msra.gmra.mrb[6].mxu1 %vm1188_vm6, %v1653_v53  ;;  %v1891_v59 = vpop.permute.xlu1 %1890 }
 0x35d   : > { %3431 = vmatpush3.bf16.xpose.msk.msra.mxu1 %vm4170_vm7, %v3429_v54  ;;  %3248 = vmatprep.mubr.msk.f32.mxu1 %vm3778_vm5, %v3779_v42 }
 0x35e   : > { %3273 = vmatprep.subr.mxu1 %v3779_v42 }
 0x360   : > { %3249 = vmatmul.mubr.msk.f32.gmra.mrb[8].mxu1 %vm1188_vm6, %v1655_v55 }
 0x361   : > { %3251 = vmatprep.mubr.msk.f32.mxu1 %vm3778_vm5, %v3779_v42 }
 0x364   : > { %3252 = vmatmul.mubr.msk.f32.gmra.mrb[10].mxu1 %vm1188_vm6, %v1657_v56 }
 0x365   : > { %3274 = vmatpush3.xpose.msk.msra.mxu1 %vm1188_vm6, %v1899_v57  ;;  %3275 = vmatprep.mubr.msk.f32.mxu1 %vm3778_vm5, %v3779_v42 }
 0x366   : > { %3435 = vmatprep.subr.bf16.mxu1 %v3777_v39 }
 0x368   : > { %3276 = vmatmul.mubr.msk.f32.vlgmr.msra.gmra.mrb[12].mxu1 %vm1188_vm6, %v1889_v58 }
 0x369   : > { %3278 = vmatprep.mubr.msk.f32.mxu1 %vm3778_vm5, %v3779_v42 }
 0x36c   : > { %3279 = vmatmul.mubr.msk.f32.gmra.mrb[14].mxu1 %vm1188_vm6, %v1891_v59 }
 0x36d   : > { %3281 = vmatprep.mubr.msk.f32.mxu1 %vm3778_vm5, %v3779_v42 }
 0x370   : > { %3282 = vmatmul.mubr.msk.f32.gmra.mrb[16].mxu1 %vm1188_vm6, %v1893_v60 }
 0x371   : > { %3307 = vmatprep.mubr.msk.f32.mxu1 %vm3778_vm5, %v3779_v42 }
 0x41d   : > { %v1267_v61 = vpop.f32.mrb[6].mxu0 }
 0x41e   : > { %v3187_v62 = vpop.f32.mrb[7].mxu0  ;;  %v1282_v63 = vsel %vm1281_vm8, %v1267_v61, -inf }
 0x41f   : > { %1283 = vmax.xlane.f32.xlu1 %v1282_v63 }
 0x421   : > { %v4232_v0 = vpop.f32.mrb[8].mxu0 }
 0x422   : > { %v3190_v1 = vpop.f32.mrb[9].mxu0  ;;  %v1285_v10 = vsel %vm1281_vm8, %v4232_v0, -inf }
 0x423   : > { %v1506_v2 = vpop.f32.mrb[0].mxu1 }
 0x424   : > { %v3217_v3 = vpop.f32.mrb[1].mxu1  ;;  %v1520_v4 = vsel %vm1281_vm8, %v1506_v2, -inf }
 0x425   : > { %1521 = vmax.xlane.f32.xlu0 %v1520_v4  ;;  %v4235_v5 = vpop.f32.mrb[10].mxu0 }
 0x426   : > { %v3193_v6 = vpop.f32.mrb[11].mxu0  ;;  %v1289_v13 = vsel %vm1288_vm9, %v4235_v5, -inf }
 0x427   : > { %v1511_v7 = vpop.f32.mrb[2].mxu1 }
 0x428   : > { %v3220_v8 = vpop.f32.mrb[3].mxu1  ;;  %v1523_v9 = vsel %vm1281_vm8, %v1511_v7, -inf }
 0x429   : > { %1524 = vmax.xlane.f32.xlu1 %v1523_v9  ;;  %1286 = vmax.xlane.f32.xlu0 %v1285_v10 }
 0x42b   : > { %v4240_v11 = vpop.f32.mrb[4].mxu1 }
 0x42c   : > { %v3223_v12 = vpop.f32.mrb[5].mxu1  ;;  %v1526_v17 = vsel %vm1288_vm9, %v4240_v11, -inf }
 0x42d   : > { %1290 = vmax.xlane.f32.xlu0 %v1289_v13 }
 0x42f   : > { %v1742_v14 = vpop.f32.mrb[6].mxu1 }
 0x430   : > { %v3247_v15 = vpop.f32.mrb[7].mxu1  ;;  %v1756_v16 = vsel %vm1281_vm8, %v1742_v14, -inf }
 0x431   : > { %1757 = vmax.xlane.f32.xlu1 %v1756_v16  ;;  %1527 = vmax.xlane.f32.xlu0 %v1526_v17 }
 0x433   : > { %v1747_v18 = vpop.f32.mrb[8].mxu1 }
 0x434   : > { %v3250_v19 = vpop.f32.mrb[9].mxu1  ;;  %v1759_v20 = vsel %vm1281_vm8, %v1747_v18, -inf }
 0x435   : > { %1760 = vmax.xlane.f32.xlu0 %v1759_v20 }
 0x437   : > { %v4248_v21 = vpop.f32.mrb[10].mxu1 }
 0x438   : > { %v3253_v22 = vpop.f32.mrb[11].mxu1  ;;  %v1762_v23 = vsel %vm1288_vm9, %v4248_v21, -inf }
 0x439   : > { %1763 = vmax.xlane.f32.xlu1 %v1762_v23 }
 0x43b   : > { %v4252_v24 = vpop.f32.mrb[12].mxu1 }
 0x43c   : > { %v3277_v26 = vpop.f32.mrb[13].mxu1  ;;  %v1992_v28 = vsel %vm1281_vm8, %v4252_v24, -inf }
 0x43d   : > { %1993 = vmax.xlane.f32.xlu0 %v1992_v28 }
 0x43f   : > { %v4256_v29 = vpop.f32.mrb[14].mxu1 }
 0x440   : > { %v3280_v30 = vpop.f32.mrb[15].mxu1  ;;  %v1995_v31 = vsel %vm1281_vm8, %v4256_v29, -inf }
 0x441   : > { %1996 = vmax.xlane.f32.xlu1 %v1995_v31 }
 0x443   : > { %v4260_v32 = vpop.f32.mrb[16].mxu1 }
 0x444   : > { %v3283_v33 = vpop.f32.mrb[17].mxu1  ;;  %v1998_v34 = vsel %vm1288_vm9, %v4260_v32, -inf }
 0x445   : > { %1999 = vmax.xlane.f32.xlu0 %v1998_v34 }
 0x452   : > { %1320 = vrot.lane.b32.xlu1 %v4155_v27, %s3787_s13 }
 0x456   : > { %3594 = vrot.lane.b32.xlu1 %v4153_v25, %s3788_s18 }
 0x45b   : > { %3589 = vrot.lane.b32.xlu0 %v4153_v25, %s3787_s13 }
 0x4ac   : > { %v1284_v35 = vpop.xlane.xlu1 %1283 }
 0x4ad   : > { %v1292_v36 = vsub.f32 %v1267_v61, %v1284_v35 }
 0x4af   : > { %v1295_v37 = vmul.f32 1.442695, %v1292_v36 }
 0x4b1   : > { %3614 = vpow2.f32 %v1295_v37 }
 0x4b2   : > { %v1522_v38 = vpop.xlane.xlu0 %1521 }
 0x4b3   : > { %v1529_v40 = vsub.f32 %v1506_v2, %v1522_v38 }
 0x4b5   : > { %v1532_v41 = vmul.f32 1.442695, %v1529_v40 }
 0x4b6   : > { %v1525_v43 = vpop.xlane.xlu1 %1524  ;;  %v1287_v44 = vpop.xlane.xlu0 %1286 }
 0x4b7   : > { %3616 = vpow2.f32 %v1532_v41  ;;  %v1530_v45 = vsub.f32 %v1511_v7, %v1525_v43  ;;  %v1293_v46 = vsub.f32 %v4232_v0, %v1287_v44 }
 0x4b9   : > { %v1534_v47 = vmul.f32 1.442695, %v1530_v45  ;;  %v1297_v48 = vmul.f32 1.442695, %v1293_v46 }
 0x4ba   : > { %v1291_v49 = vpop.xlane.xlu0 %1290 }
 0x4bb   : > { %v4269_v50 = vpop.eup %3614  ;;  %3618 = vpow2.f32 %v1534_v47  ;;  %v1294_v51 = vsub.f32 %v4235_v5, %v1291_v49 }
 0x4bc   : > { %3620 = vpow2.f32 %v1297_v48  ;;  %v1301_v52 = vsel %vm1281_vm8, %v4269_v50, 0.0 }
 0x4bd   : > { %v1299_v53 = vmul.f32 1.442695, %v1294_v51  ;;  %1302 = vadd.xlane.f32.xlu1 %v1301_v52 }
 0x4be   : > { %v1758_v54 = vpop.xlane.xlu1 %1757  ;;  %v1528_v55 = vpop.xlane.xlu0 %1527 }
 0x4bf   : > { %3622 = vpow2.f32 %v1299_v53  ;;  %v1765_v56 = vsub.f32 %v1742_v14, %v1758_v54  ;;  %v1531_v57 = vsub.f32 %v4240_v11, %v1528_v55 }
 0x4c1   : > { %v4275_v58 = vpop.eup %3616  ;;  %v1536_v59 = vmul.f32 1.442695, %v1531_v57  ;;  %v1768_v60 = vmul.f32 1.442695, %v1765_v56 }
 0x4c2   : > { %v1761_v61 = vpop.xlane.xlu0 %1760  ;;  %v1538_v62 = vsel %vm1281_vm8, %v4275_v58, 0.0 }
 0x4c3   : > { %v1766_v63 = vsub.f32 %v1747_v18, %v1761_v61  ;;  %1539 = vadd.xlane.f32.xlu0 %v1538_v62  ;;  %3624 = vpow2.f32 %v1536_v59 }
 0x4c4   : > { %3626 = vpow2.f32 %v1768_v60 }
 0x4c5   : > { %v4279_v0 = vpop.eup %3618  ;;  %v1770_v1 = vmul.f32 1.442695, %v1766_v63 }
 0x4c6   : > { %v4281_v2 = vpop.eup %3620  ;;  %v1764_v3 = vpop.xlane.xlu1 %1763  ;;  %v1541_v4 = vsel %vm1281_vm8, %v4279_v0, 0.0 }
 0x4c7   : > { %3628 = vpow2.f32 %v1770_v1  ;;  %v1767_v5 = vsub.f32 %v4248_v21, %v1764_v3  ;;  %1542 = vadd.xlane.f32.xlu1 %v1541_v4  ;;  %v1304_v6 = vsel %vm1281_vm8, %v4281_v2, 0.0 }
 0x4c8   : > { %1305 = vadd.xlane.f32.xlu0 %v1304_v6 }
 0x4c9   : > { %v4288_v7 = vpop.eup %3622  ;;  %v1772_v8 = vmul.f32 1.442695, %v1767_v5 }
 0x4ca   : > { %v1994_v9 = vpop.xlane.xlu0 %1993  ;;  %v1307_v10 = vsel %vm1288_vm9, %v4288_v7, 0.0 }
 0x4cb   : > { %3630 = vpow2.f32 %v1772_v8  ;;  %v2001_v11 = vsub.f32 %v4252_v24, %v1994_v9  ;;  %1308 = vadd.xlane.f32.xlu1 %v1307_v10 }
 0x4cd   : > { %v2004_v12 = vmul.f32 1.442695, %v2001_v11  ;;  %v4293_v13 = vpop.eup %3624 }
 0x4ce   : > { %v1544_v14 = vsel %vm1288_vm9, %v4293_v13, 0.0  ;;  %v4297_v15 = vpop.eup %3626  ;;  %v1997_v28 = vpop.xlane.xlu1 %1996 }
 0x4cf   : > { %3632 = vpow2.f32 %v2004_v12  ;;  %1545 = vadd.xlane.f32.xlu1 %v1544_v14  ;;  %v1774_v19 = vsel %vm1281_vm8, %v4297_v15, 0.0  ;;  %v2002_v34 = vsub.f32 %v4256_v29, %v1997_v28 }
 0x4d1   : > { %v4299_v16 = vpop.eup %3628  ;;  %v2006_v36 = vmul.f32 1.442695, %v2002_v34 }
 0x4d2   : > { %v2000_v17 = vpop.xlane.xlu0 %1999  ;;  %v1777_v18 = vsel %vm1281_vm8, %v4299_v16, 0.0  ;;  %v1321_v33 = vpop.permute.xlu1 %1320 }
 0x4d3   : > { %1778 = vadd.xlane.f32.xlu0 %v1777_v18  ;;  %1775 = vadd.xlane.f32.xlu1 %v1774_v19  ;;  %v2003_v35 = vsub.f32 %v4260_v32, %v2000_v17  ;;  %3634 = vpow2.f32 %v2006_v36 }
 0x4d5   : > { %v4305_v20 = vpop.eup %3630  ;;  %v2008_v37 = vmul.f32 1.442695, %v2003_v35 }
 0x4d6   : > { %v3590_v21 = vpop.permute.xlu0 %3589  ;;  %v1780_v22 = vsel %vm1288_vm9, %v4305_v20, 0.0  ;;  %v3595_v29 = vpop.permute.xlu1 %3594 }
 0x4d7   : > { %v3592_v23 = vunpack.i.h.bf16 %v3590_v21  ;;  %v3591_v24 = vunpack.i.l.bf16 %v3590_v21  ;;  %1781 = vadd.xlane.f32.xlu1 %v1780_v22  ;;  %3636 = vpow2.f32 %v2008_v37  ;;  %v3597_v45 = vunpack.i.h.bf16 %v3595_v29 }
 0x4d8   : > { %v3596_v46 = vunpack.i.l.bf16 %v3595_v29 }
 0x4d9   : > { %v4309_v26 = vpop.eup %3632  ;;  %v3412_v30 = vpack.c.bf16 %v3592_v23, %v3591_v24 }
 0x4da   : > { %v2010_v31 = vsel %vm1281_vm8, %v4309_v26, 0.0  ;;  %v3419_v52 = vpack.c.bf16 %v3597_v45, %v3596_v46  ;;  %v2173_v46 = vld [vmem:[%s4024_s24 + $0x10] sm:$0xff] }
 0x4db   : > { %2011 = vadd.xlane.f32.xlu0 %v2010_v31  ;;  %3413 = vmatpush3.bf16.msra.mxu0 %v3412_v30 }
 0x4dc   : > { %3198 = vmatprep.subr.mxu0 %v3779_v42 }
 0x4dd   : > { %v4321_v38 = vpop.eup %3634 }
 0x4de   : > { %v2013_v41 = vsel %vm1281_vm8, %v4321_v38, 0.0 }
 0x4df   : > { %3199 = vmatpush3.msk.msra.mxu0 %vm1333_vm10, %v1321_v33 }
 0x4e0   : > { %3418 = vmatprep.subr.bf16.mxu0 %v3777_v39 }
 0x4e1   : > { %v4323_v40 = vpop.eup %3636 }
 0x4e2   : > { %v2016_v43 = vsel %vm1288_vm9, %v4323_v40, 0.0 }
 0x4e8   : > { %3599 = vrot.lane.b32.xlu1 %v4153_v25, %s3789_s23 }
 0x4f1   : > { %1557 = vrot.lane.b32.xlu0 %v4155_v27, %s3788_s18 }
 0x50c   : > { %2014 = vadd.xlane.f32.xlu1 %v2013_v41 }
 0x510   : > { %2017 = vadd.xlane.f32.xlu0 %v2016_v43 }
 0x51d   : > { %1793 = vrot.lane.b32.xlu1 %v4155_v27, %s3789_s23 }
 0x521   : > { %3604 = vrot.lane.b32.xlu1 %v4153_v25, %s3790_s21 }
 0x525   : > { %2029 = vrot.lane.b32.xlu1 %v4155_v27, %s3790_s21 }
 0x54a   : > { %v1303_v32 = vpop.xlane.xlu1 %1302 }
 0x54b   : > { %3638 = vrcp.f32 %v1303_v32  ;;  %v2171_v32 = vld [vmem:[%s4024_s24] sm:$0xff] }
 0x550   : > { %v1540_v44 = vpop.xlane.xlu0 %1539 }
 0x554   : > { %v1543_v47 = vpop.xlane.xlu1 %1542 }
 0x555   : > { %v3639_v48 = vpop.eup %3638  ;;  %v1306_v49 = vpop.xlane.xlu0 %1305 }
 0x556   : > { %v1313_v51 = vmul.f32 %v3639_v48, %v4269_v50  ;;  %3640 = vrcp.f32 %v1306_v49 }
 0x558   : > { %v1309_v53 = vpop.xlane.xlu1 %1308  ;;  %3201 = vmatmul.mubr.msk.f32.vlgmr.msra.gmra.mrb[12].mxu0 %vm1281_vm8, %v1313_v51 }
 0x559   : > { %3642 = vrcp.f32 %v1309_v53  ;;  %3420 = vmatpush3.bf16.msra.mxu0 %v3419_v52  ;;  %3203 = vmatprep.mubr.msk.f32.mxu0 %vm3778_vm5, %v3779_v42 }
 0x55a   : > { %3228 = vmatprep.subr.mxu0 %v3779_v42  ;;  %3644 = vrcp.f32 %v1540_v44  ;;  %v2172_v44 = vld [vmem:[%s4024_s24 + $0x8] sm:$0xff] }
 0x55b   : > { %3646 = vrcp.f32 %v1543_v47  ;;  %v3436_v45 = vpack.c.bf16 %v2172_v44, %v2171_v32  ;;  %v2174_v47 = vld [vmem:[%s4024_s24 + $0x18] sm:$0xff]  ;;  %v2340_v32 = vld [vmem:[%s4041_s0 + $0x8] sm:$0xff] }
 0x55c   : > { %v1546_v25 = vpop.xlane.xlu1 %1545  ;;  %v3439_v48 = vpack.c.bf16 %v2174_v47, %v2173_v46  ;;  %v2342_v46 = vld [vmem:[%s4041_s0 + $0x18] sm:$0xff] }
 0x55d   : > { %3648 = vrcp.f32 %v1546_v25  ;;  %3437 = vmatpush3.bf16.msra.mxu1 %v3436_v45  ;;  %v2341_v45 = vld [vmem:[%s4041_s0 + $0x10] sm:$0xff] }
 0x55e   : > { %3438 = vmatprep.subr.bf16.mxu1 %v3777_v39  ;;  %v3445_v47 = vpack.c.bf16 %v2342_v46, %v2341_v45  ;;  %v2478_v45 = vld [vmem:[%s4055_s11 + $0x60] sm:$0xff]  ;;  %v2479_v46 = vld [vmem:[%s4055_s11 + $0x68] sm:$0xff] }
 0x560   : > { %v3641_v27 = vpop.eup %3640  ;;  %v1776_v54 = vpop.xlane.xlu1 %1775 }
 0x561   : > { %v1314_v55 = vmul.f32 %v3641_v27, %v4281_v2  ;;  %v1779_v50 = vpop.xlane.xlu0 %1778  ;;  %3650 = vrcp.f32 %v1776_v54  ;;  %3440 = vmatpush3.bf16.msra.mxu1 %v3439_v48  ;;  %v2466_v48 = vld [vmem:[%s4055_s11] sm:$0xff] }
 0x562   : > { %3652 = vrcp.f32 %v1779_v50  ;;  %3447 = vmatprep.subr.bf16.mxu1 %v3777_v39 }
 0x563   : > { %v3643_v56 = vpop.eup %3642  ;;  %3204 = vmatmul.mubr.msk.f32.gmra.mrb[14].mxu0 %vm1281_vm8, %v1314_v55 }
 0x564   : > { %3206 = vmatprep.mubr.msk.f32.mxu0 %vm3778_vm5, %v3779_v42  ;;  %v1315_v57 = vmul.f32 %v3643_v56, %v4288_v7  ;;  %v1782_v59 = vpop.xlane.xlu1 %1781  ;;  %v3645_v61 = vpop.eup %3644 }
 0x565   : > { %v1550_v2 = vmul.f32 %v3645_v61, %v4275_v58  ;;  %v3647_v4 = vpop.eup %3646  ;;  %3654 = vrcp.f32 %v1782_v59 }
 0x566   : > { %v1551_v6 = vmul.f32 %v3647_v4, %v4279_v0 }
 0x567   : > { %3207 = vmatmul.mubr.msk.f32.gmra.mrb[16].mxu0 %vm1281_vm8, %v1315_v57  ;;  %v3649_v7 = vpop.eup %3648 }
 0x568   : > { %v2012_v60 = vpop.xlane.xlu0 %2011  ;;  %3230 = vmatprep.mubr.msk.f32.mxu0 %vm3778_vm5, %v3779_v42  ;;  %v3600_v62 = vpop.permute.xlu1 %3599  ;;  %v1552_v58 = vmul.f32 %v3649_v7, %v4293_v13 }
 0x569   : > { %v3602_v63 = vunpack.i.h.bf16 %v3600_v62  ;;  %v3601_v1 = vunpack.i.l.bf16 %v3600_v62  ;;  %3656 = vrcp.f32 %v2012_v60 }
 0x56b   : > { %v3426_v5 = vpack.c.bf16 %v3602_v63, %v3601_v1  ;;  %v3651_v0 = vpop.eup %3650 }
 0x56c   : > { %v1558_v3 = vpop.permute.xlu0 %1557  ;;  %v1786_v9 = vmul.f32 %v3651_v0, %v4297_v15  ;;  %v3653_v11 = vpop.eup %3652 }
 0x56d   : > { %3229 = vmatpush3.msk.msra.mxu0 %vm1333_vm10, %v1558_v3  ;;  %v1787_v14 = vmul.f32 %v3653_v11, %v4299_v16 }
 0x56e   : > { %3231 = vmatmul.mubr.msk.f32.vlgmr.msra.gmra.mrb[18].mxu0 %vm1281_vm8, %v1550_v2  ;;  %3425 = vmatprep.subr.bf16.mxu0 %v3777_v39 }
 0x56f   : > { %3427 = vmatpush3.bf16.msra.mxu0 %v3426_v5  ;;  %3233 = vmatprep.mubr.msk.f32.mxu0 %vm3778_vm5, %v3779_v42  ;;  %v3655_v17 = vpop.eup %3654 }
 0x570   : > { %3258 = vmatprep.subr.mxu0 %v3779_v42  ;;  %v1788_v21 = vmul.f32 %v3655_v17, %v4305_v20 }
 0x572   : > { %3234 = vmatmul.mubr.msk.f32.gmra.mrb[20].mxu0 %vm1281_vm8, %v1551_v6 }
 0x573   : > { %3236 = vmatprep.mubr.msk.f32.mxu0 %vm3778_vm5, %v3779_v42  ;;  %v3657_v22 = vpop.eup %3656 }
 0x574   : > { %v2022_v16 = vmul.f32 %v3657_v22, %v4309_v26 }
 0x576   : > { %3237 = vmatmul.mubr.msk.f32.gmra.mrb[22].mxu0 %vm1281_vm8, %v1552_v58 }
 0x577   : > { %3260 = vmatprep.mubr.msk.f32.mxu0 %vm3778_vm5, %v3779_v42 }
 0x599   : > { %v2015_v8 = vpop.xlane.xlu1 %2014 }
 0x59a   : > { %3658 = vrcp.f32 %v2015_v8 }
 0x59d   : > { %v1794_v10 = vpop.permute.xlu1 %1793  ;;  %v2018_v12 = vpop.xlane.xlu0 %2017 }
 0x59e   : > { %3259 = vmatpush3.msk.msra.mxu0 %vm1333_vm10, %v1794_v10  ;;  %3660 = vrcp.f32 %v2018_v12 }
 0x59f   : > { %3261 = vmatmul.mubr.msk.f32.vlgmr.msra.gmra.mrb[24].mxu0 %vm1281_vm8, %v1786_v9  ;;  %3432 = vmatprep.subr.bf16.mxu0 %v3777_v39 }
 0x5a0   : > { %3263 = vmatprep.mubr.msk.f32.mxu0 %vm3778_vm5, %v3779_v42 }
 0x5a1   : > { %v3605_v13 = vpop.permute.xlu1 %3604 }
 0x5a2   : > { %v3607_v18 = vunpack.i.h.bf16 %v3605_v13  ;;  %v3606_v19 = vunpack.i.l.bf16 %v3605_v13  ;;  %v3014_v13 = vld [vmem:[%s4684_s1] ss:$0 sm:$0xff] }
 0x5a3   : > { %3264 = vmatmul.mubr.msk.f32.gmra.mrb[26].mxu0 %vm1281_vm8, %v1787_v14 }
 0x5a4   : > { %v3433_v15 = vpack.c.bf16 %v3607_v18, %v3606_v19  ;;  %3266 = vmatprep.mubr.msk.f32.mxu0 %vm3778_vm5, %v3779_v42  ;;  %v3659_v24 = vpop.eup %3658  ;;  %v3674_v19 = vld [vmem:[#allocation2] sm:$0xff] }
 0x5a5   : > { %v2030_v23 = vpop.permute.xlu1 %2029  ;;  %v2023_v20 = vmul.f32 %v3659_v24, %v4321_v38 }
 0x5a6   : > { %3434 = vmatpush3.bf16.msra.mxu0 %v3433_v15 }
 0x5a7   : > { %3267 = vmatmul.mubr.msk.f32.gmra.mrb[28].mxu0 %vm1281_vm8, %v1788_v21  ;;  %3288 = vmatprep.subr.mxu0 %v3779_v42 }
 0x5a8   : > { %3290 = vmatprep.mubr.msk.f32.mxu0 %vm3778_vm5, %v3779_v42  ;;  %v3661_v28 = vpop.eup %3660 }
 0x5a9   : > { %v2024_v26 = vmul.f32 %v3661_v28, %v4323_v40 }
 0x5aa   : > { %3289 = vmatpush3.msk.msra.mxu0 %vm1333_vm10, %v2030_v23 }
 0x5ab   : > { %3291 = vmatmul.mubr.msk.f32.vlgmr.msra.gmra.mrb[30].mxu0 %vm1281_vm8, %v2022_v16  ;;  %3441 = vmatprep.subr.bf16.mxu0 %v3777_v39 }
 0x5ac   : > { %3293 = vmatprep.mubr.msk.f32.mxu0 %vm3778_vm5, %v3779_v42 }
 0x5af   : > { %3294 = vmatmul.mubr.msk.f32.gmra.mrb[32].mxu0 %vm1281_vm8, %v2023_v20  ;;  %v3675_v20 = vld [vmem:[#allocation2 + $0x8] sm:$0xff] }
 0x5b0   : > { %3296 = vmatprep.mubr.msk.f32.mxu0 %vm3778_vm5, %v3779_v42 }
 0x5b3   : > { %3297 = vmatmul.mubr.msk.f32.gmra.mrb[34].mxu0 %vm1281_vm8, %v2024_v26 }
 0x5b4   : > { %3324 = vmatprep.mubr.msk.f32.mxu0 %vm3778_vm5, %v3779_v42 }
 0x62b   : > { %v1402_v30 = vpop.f32.mrb[12].mxu0 }
 0x62c   : > { %v3202_v31 = vpop.f32.mrb[13].mxu0 }
 0x636   : > { %v1407_v33 = vpop.f32.mrb[14].mxu0 }
 0x637   : > { %v3205_v34 = vpop.f32.mrb[15].mxu0 }
 0x63a   : > { %v1412_v35 = vpop.f32.mrb[16].mxu0 }
 0x63b   : > { %v3208_v36 = vpop.f32.mrb[17].mxu0 }
 0x641   : > { %v1638_v37 = vpop.f32.mrb[18].mxu0 }
 0x642   : > { %2127 = vrot.lane.b32.xlu1 %v1638_v37, %s3791_s7  ;;  %v3232_v38 = vpop.f32.mrb[19].mxu0 }
 0x645   : > { %v1643_v40 = vpop.f32.mrb[20].mxu0 }
 0x646   : > { %2129 = vrot.lane.b32.xlu0 %v1643_v40, %s3791_s7  ;;  %v3235_v41 = vpop.f32.mrb[21].mxu0 }
 0x649   : > { %v1648_v43 = vpop.f32.mrb[22].mxu0 }
 0x64a   : > { %2131 = vrot.lane.b32.xlu1 %v1648_v43, %s3791_s7  ;;  %v3238_v29 = vpop.f32.mrb[23].mxu0 }
 0x64b   : > { %v2339_v29 = vld [vmem:[%s4041_s0] sm:$0xff] }
 0x64c   : > { %v3442_v44 = vpack.c.bf16 %v2340_v32, %v2339_v29  ;;  %v2476_v29 = vld [vmem:[%s4055_s11 + $0x50] sm:$0xff]  ;;  %v2477_v32 = vld [vmem:[%s4055_s11 + $0x58] sm:$0xff] }
 0x64e   : > { %3443 = vmatpush3.bf16.msra.mxu0 %v3442_v44  ;;  %v3463_v44 = vpack.c.bf16 %v2477_v32, %v2476_v29 }
 0x64f   : > { %3444 = vmatprep.subr.bf16.mxu0 %v3777_v39 }
 0x652   : > { %3446 = vmatpush3.bf16.msra.mxu0 %v3445_v47  ;;  %v3466_v47 = vpack.c.bf16 %v2479_v46, %v2478_v45 }
 0x672   : > { %v1874_v49 = vpop.f32.mrb[24].mxu0 }
 0x673   : > { %2139 = vrot.lane.b32.xlu1 %v1874_v49, %s3792_s29  ;;  %v3262_v51 = vpop.f32.mrb[25].mxu0  ;;  %v2467_v49 = vld [vmem:[%s4055_s11 + $0x8] sm:$0xff] }
 0x674   : > { %v3448_v51 = vpack.c.bf16 %v2467_v49, %v2466_v48  ;;  %v2480_v48 = vld [vmem:[%s4055_s11 + $0x70] sm:$0xff]  ;;  %v2481_v49 = vld [vmem:[%s4055_s11 + $0x78] sm:$0xff] }
 0x676   : > { %v1879_v52 = vpop.f32.mrb[26].mxu0 }
 0x677   : > { %2141 = vrot.lane.b32.xlu1 %v1879_v52, %s3792_s29  ;;  %v3265_v53 = vpop.f32.mrb[27].mxu0 }
 0x67a   : > { %v1884_v25 = vpop.f32.mrb[28].mxu0 }
 0x67b   : > { %2143 = vrot.lane.b32.xlu1 %v1884_v25, %s3792_s29  ;;  %v3268_v27 = vpop.f32.mrb[29].mxu0 }
 0x67e   : > { %v2110_v54 = vpop.f32.mrb[30].mxu0 }
 0x67f   : > { %2151 = vrot.lane.b32.xlu1 %v2110_v54, %s3793_s19  ;;  %v3292_v55 = vpop.f32.mrb[31].mxu0 }
 0x682   : > { %v2115_v56 = vpop.f32.mrb[32].mxu0 }
 0x683   : > { %2153 = vrot.lane.b32.xlu1 %v2115_v56, %s3793_s19  ;;  %v3295_v50 = vpop.f32.mrb[33].mxu0 }
 0x686   : > { %v2120_v57 = vpop.f32.mrb[34].mxu0 }
 0x687   : > { %2155 = vrot.lane.b32.xlu1 %v2120_v57, %s3793_s19  ;;  %v3298_v59 = vpop.f32.mrb[35].mxu0 }
 0x6b4   : > { %v2128_v60 = vpop.permute.xlu1 %2127 }
 0x6b5   : > { %v2160_v2 = vsel %vm1188_vm6, %v1402_v30, %v2128_v60 }
 0x6b8   : > { %v2130_v3 = vpop.permute.xlu0 %2129 }
 0x6b9   : > { %v2161_v7 = vsel %vm1188_vm6, %v1407_v33, %v2130_v3 }
 0x6bc   : > { %v2132_v61 = vpop.permute.xlu1 %2131 }
 0x6bd   : > { %v2162_v9 = vsel %vm1188_vm6, %v1412_v35, %v2132_v61  ;;  %v3676_v35 = vld [vmem:[#allocation2 + $0x10] sm:$0xf] }
 0x6e5   : > { %v2140_v62 = vpop.permute.xlu1 %2139 }
 0x6e6   : > { %v2164_v4 = vsel %vm2163_vm11, %v2160_v2, %v2140_v62 }
 0x6e9   : > { %v2142_v63 = vpop.permute.xlu1 %2141 }
 0x6ea   : > { %v2165_v58 = vsel %vm2163_vm11, %v2161_v7, %v2142_v63 }
 0x6ed   : > { %v2144_v1 = vpop.permute.xlu1 %2143 }
 0x6ee   : > { %v2166_v10 = vsel %vm2163_vm11, %v2162_v9, %v2144_v1 }
 0x6f1   : > { %v2152_v5 = vpop.permute.xlu1 %2151 }
 0x6f2   : > { %v2168_v6 = vsel %vm2167_vm12, %v2164_v4, %v2152_v5 }
 0x6f3   : > { %3308 = vmatmul.mubr.msk.f32.vlgmr.msra.gmra.mrb[18].mxu1 %vm1014_vm3, %v2168_v6 }
 0x6f4   : > { %3310 = vmatprep.mubr.msk.f32.mxu1 %vm3778_vm5, %v3779_v42  ;;  %3449 = vmatpush3.bf16.msra.mxu1 %v3448_v51  ;;  %v3469_v51 = vpack.c.bf16 %v2481_v49, %v2480_v48 }
 0x6f5   : > { %v2154_v8 = vpop.permute.xlu1 %2153  ;;  %3450 = vmatprep.subr.bf16.mxu1 %v3777_v39 }
 0x6f6   : > { %v2169_v0 = vsel %vm2167_vm12, %v2165_v58, %v2154_v8 }
 0x6f7   : > { %3311 = vmatmul.mubr.msk.f32.gmra.mrb[20].mxu1 %vm1014_vm3, %v2169_v0  ;;  %v3018_v0 = vld [vmem:[%s4686_s22] ss:$0 sm:$0xff] }
 0x6f8   : > { %3313 = vmatprep.mubr.msk.f32.mxu1 %vm3778_vm5, %v3779_v42 }
 0x6f9   : > { %v2156_v11 = vpop.permute.xlu1 %2155 }
 0x6fa   : > { %v2170_v12 = vsel %vm2167_vm12, %v2166_v10, %v2156_v11  ;;  %v3019_v10 = vld [vmem:[%s4687_s3] ss:$0 sm:$0xff] }
 0x6fb   : > { %3314 = vmatmul.mubr.msk.f32.gmra.mrb[22].mxu1 %vm1014_vm3, %v2170_v12 }
 0x6fc   : > { %3365 = vmatprep.mubr.msk.f32.mxu1 %vm3778_vm5, %v3779_v42 }
 0x7c6   : > { %v2257_v14 = vpop.f32.mrb[18].mxu1 }
 0x7c7   : > { %v2258_v17 = vadd.f32 %v3014_v13, %v2257_v14  ;;  %v3309_v18 = vpop.f32.mrb[19].mxu1 }
 0x7c9   : > { %v4418_v15 = vadd.f32 %v3674_v19, %v2258_v17 }
 0x7ca   : > { %v2262_v21 = vpop.f32.mrb[20].mxu1 }
 0x7cb   : > { %v2263_v22 = vadd.f32 %v3014_v13, %v2262_v21  ;;  %v3312_v16 = vpop.f32.mrb[21].mxu1  ;;  %v2276_v23 = vsel %vm1014_vm3, %v4418_v15, 0.0  ;;  %v2288_v24 = vmul.f32 %v4418_v15, %v4418_v15 }
 0x7cc   : > { %2277 = vadd.xlane.f32.xlu1 %v2276_v23 }
 0x7cd   : > { %v4424_v28 = vadd.f32 %v3675_v20, %v2263_v22  ;;  %v2291_v26 = vsel %vm1014_vm3, %v2288_v24, 0.0  ;;  %v2468_v20 = vld [vmem:[%s4055_s11 + $0x10] sm:$0xff] }
 0x7ce   : > { %2292 = vadd.xlane.f32.xlu0 %v2291_v26  ;;  %v2267_v30 = vpop.f32.mrb[22].mxu1  ;;  %v2469_v26 = vld [vmem:[%s4055_s11 + $0x18] sm:$0xff] }
 0x7cf   : > { %v2268_v31 = vadd.f32 %v3014_v13, %v2267_v30  ;;  %v3315_v33 = vpop.f32.mrb[23].mxu1  ;;  %v2289_v34 = vmul.f32 %v4424_v28, %v4424_v28  ;;  %v2279_v37 = vsel %vm1014_vm3, %v4424_v28, 0.0  ;;  %v3451_v30 = vpack.c.bf16 %v2469_v26, %v2468_v20 }
 0x7d0   : > { %v2471_v33 = vld [vmem:[%s4055_s11 + $0x28] sm:$0xff] }
 0x7d1   : > { %v4429_v36 = vadd.f32 %v3676_v35, %v2268_v31  ;;  %v2294_v38 = vsel %vm1014_vm3, %v2289_v34, 0.0  ;;  %3452 = vmatpush3.bf16.msra.mxu1 %v3451_v30  ;;  %v2470_v31 = vld [vmem:[%s4055_s11 + $0x20] sm:$0xff]  ;;  %v2472_v35 = vld [vmem:[%s4055_s11 + $0x30] sm:$0xff] }
 0x7d2   : > { %2280 = vadd.xlane.f32.xlu0 %v2279_v37  ;;  %2295 = vadd.xlane.f32.xlu1 %v2294_v38  ;;  %v3454_v34 = vpack.c.bf16 %v2471_v33, %v2470_v31  ;;  %v2473_v37 = vld [vmem:[%s4055_s11 + $0x38] sm:$0xff] }
 0x7d3   : > { %v2290_v40 = vmul.f32 %v4429_v36, %v4429_v36  ;;  %v2282_v43 = vsel %vm1021_vm4, %v4429_v36, 0.0  ;;  %3453 = vmatprep.subr.bf16.mxu1 %v3777_v39  ;;  %v3457_v38 = vpack.c.bf16 %v2473_v37, %v2472_v35 }
 0x7d5   : > { %v2297_v41 = vsel %vm1021_vm4, %v2290_v40, 0.0  ;;  %3455 = vmatpush3.bf16.msra.mxu1 %v3454_v34  ;;  %v2474_v40 = vld [vmem:[%s4055_s11 + $0x40] sm:$0xff] }
 0x7d6   : > { %2298 = vadd.xlane.f32.xlu1 %v2297_v41  ;;  %2283 = vadd.xlane.f32.xlu0 %v2282_v43  ;;  %v2475_v41 = vld [vmem:[%s4055_s11 + $0x48] sm:$0xff] }
 0x7d7   : > { %3456 = vmatprep.subr.bf16.mxu1 %v3777_v39  ;;  %v3460_v43 = vpack.c.bf16 %v2475_v41, %v2474_v40 }
 0x7d9   : > { %3458 = vmatpush3.bf16.msra.mxu1 %v3457_v38 }
 0x7da   : > { %3459 = vmatprep.subr.bf16.mxu1 %v3777_v39 }
 0x7dd   : > { %3461 = vmatpush3.bf16.msra.mxu1 %v3460_v43 }
 0x7de   : > { %3462 = vmatprep.subr.bf16.mxu1 %v3777_v39 }
 0x7e1   : > { %3464 = vmatpush3.bf16.msra.mxu1 %v3463_v44 }
 0x7e2   : > { %3465 = vmatprep.subr.bf16.mxu1 %v3777_v39 }
 0x7e5   : > { %3467 = vmatpush3.bf16.msra.mxu1 %v3466_v47 }
 0x7e6   : > { %3468 = vmatprep.subr.bf16.mxu1 %v3777_v39 }
 0x7e9   : > { %3470 = vmatpush3.bf16.msra.mxu1 %v3469_v51 }
 0x859   : > { %v2278_v52 = vpop.xlane.xlu1 %2277 }
 0x85a   : > { %v2285_v53 = vmul.f32 0.03125, %v2278_v52  ;;  %v3020_v52 = vld [vmem:[%s887_s25] ss:$0 sm:$0xff] }
 0x85b   : > { %v2293_v25 = vpop.xlane.xlu0 %2292 }
 0x85c   : > { %v2303_v27 = vmul.f32 %v2285_v53, %v2285_v53  ;;  %v2300_v54 = vmul.f32 0.03125, %v2293_v25  ;;  %v2309_v58 = vsub.f32 %v4418_v15, %v2285_v53 }
 0x85e   : > { %v2306_v55 = vsub.f32 %v2300_v54, %v2303_v27 }
 0x85f   : > { %v2281_v56 = vpop.xlane.xlu0 %2280  ;;  %v2296_v50 = vpop.xlane.xlu1 %2295 }
 0x860   : > { %v2312_v57 = vadd.f32 1e-05, %v2306_v55  ;;  %v2286_v59 = vmul.f32 0.03125, %v2281_v56  ;;  %v2301_v61 = vmul.f32 0.03125, %v2296_v50 }
 0x862   : > { %3662 = vrsqrt.f32 %v2312_v57  ;;  %v2304_v60 = vmul.f32 %v2286_v59, %v2286_v59  ;;  %v2310_v12 = vsub.f32 %v4424_v28, %v2286_v59 }
 0x863   : > { %v2284_v62 = vpop.xlane.xlu0 %2283  ;;  %v2299_v63 = vpop.xlane.xlu1 %2298 }
 0x864   : > { %v2307_v1 = vsub.f32 %v2301_v61, %v2304_v60  ;;  %v2287_v2 = vmul.f32 0.03125, %v2284_v62  ;;  %v2302_v5 = vmul.f32 0.03125, %v2299_v63 }
 0x866   : > { %v2313_v3 = vadd.f32 1e-05, %v2307_v1  ;;  %v2305_v4 = vmul.f32 %v2287_v2, %v2287_v2  ;;  %v2311_v18 = vsub.f32 %v4429_v36, %v2287_v2 }
 0x868   : > { %3664 = vrsqrt.f32 %v2313_v3  ;;  %v2308_v6 = vsub.f32 %v2302_v5, %v2305_v4 }
 0x86a   : > { %v2314_v7 = vadd.f32 1e-05, %v2308_v6 }
 0x86c   : > { %v3663_v8 = vpop.eup %3662  ;;  %3666 = vrsqrt.f32 %v2314_v7 }
 0x86d   : > { %v2318_v9 = vmul.f32 %v3663_v8, %v2309_v58 }
 0x86f   : > { %v2327_v11 = vmul.f32 %v3018_v0, %v2318_v9 }
 0x871   : > { %v2336_v13 = vadd.f32 %v3019_v10, %v2327_v11 }
 0x872   : > { %v3665_v14 = vpop.eup %3664 }
 0x873   : > { %3325 = vmatmul.mubr.msk.f32.vlgmr.msra.gmra.mrb[36].mxu0 %vm1014_vm3, %v2336_v13  ;;  %v2319_v17 = vmul.f32 %v3665_v14, %v2310_v12 }
 0x874   : > { %3327 = vmatprep.mubr.msk.f32.mxu0 %vm3778_vm5, %v3779_v42 }
 0x875   : > { %v2328_v19 = vmul.f32 %v3018_v0, %v2319_v17 }
 0x876   : > { %v3667_v21 = vpop.eup %3666 }
 0x877   : > { %v2337_v22 = vadd.f32 %v3019_v10, %v2328_v19  ;;  %v2320_v16 = vmul.f32 %v3667_v21, %v2311_v18 }
 0x879   : > { %3328 = vmatmul.mubr.msk.f32.gmra.mrb[38].mxu0 %vm1014_vm3, %v2337_v22  ;;  %v2329_v23 = vmul.f32 %v3018_v0, %v2320_v16 }
 0x87a   : > { %3330 = vmatprep.mubr.msk.f32.mxu0 %vm3778_vm5, %v3779_v42 }
 0x87b   : > { %v2338_v24 = vadd.f32 %v3019_v10, %v2329_v23  ;;  %v3024_v23 = vld [vmem:[%s895_s9] ss:$0 sm:$0xff]  ;;  %s4689_s9 = sld [smem:[#allocation9_spill]] }
 0x87d   : > { %3331 = vmatmul.mubr.msk.f32.gmra.mrb[40].mxu0 %vm1014_vm3, %v2338_v24 }
 0x881   : > { %p3025_p1 = scmp.ne.s32.totalorder %s4689_s9, 1 }
 0x882   : > { %vm2581_vm13 = vcmask (!%p3025_p1), 261124   ;;  %s4690_s23 = sld [smem:[#allocation34_spill]] (!%p3025_p1)  ;;  %v3794_v46 = vmov (!%p3025_p1), 0.0|0.0   ;;  %vm3795_vm14 = vmmov (!%p3025_p1), 0   ;;  %v3796_v49 = vmov (!%p3025_p1), 0.0   ;;  %s4691_s30 = sld [smem:[#allocation32_spill]] (!%p3025_p1) }
 0x883   : > { %3471 = vmatprep.subr.bf16.mxu0 (!%p3025_p1), %v3794_v46  ;;  %3382 = vmatprep.mubr.msk.f32.mxu0 (!%p3025_p1), %vm3795_vm14, %v3796_v49  ;;  %s4692_s26 = sld [smem:[#allocation33_spill]] (!%p3025_p1)  ;;  %s4693_s17 = sld [smem:[#allocation35_spill]] (!%p3025_p1) }
 0x888   : > { %v2629_v44 = vld [vmem:[%s4690_s23 + $0x8] sm:$0xff] (!%p3025_p1)  ;;  %v2630_v45 = vld [vmem:[%s4690_s23 + $0x10] sm:$0xff] (!%p3025_p1)  ;;  %v2631_v48 = vld [vmem:[%s4690_s23 + $0x18] sm:$0xff] (!%p3025_p1) }
 0x889   : > { %v3475_v51 = vpack.c.bf16 (!%p3025_p1), %v2631_v48, %v2630_v45 }
 0x946   : > { %v2425_v53 = vpop.f32.mrb[36].mxu0 }
 0x947   : > { %v2426_v25 = vadd.f32 %v3020_v52, %v2425_v53  ;;  %v3326_v27 = vpop.f32.mrb[37].mxu0 }
 0x949   : > { %v2442_v54 = vmul.f32 0.044715, %v2426_v25  ;;  %v2439_v10 = vmul.f32 0.5, %v2426_v25 }
 0x94b   : > { %v2445_v55 = vmul.f32 %v2442_v54, %v2426_v25 }
 0x94c   : > { %v2430_v56 = vpop.f32.mrb[38].mxu0 }
 0x94d   : > { %v2448_v50 = vmul.f32 %v2445_v55, %v2426_v25  ;;  %v2431_v57 = vadd.f32 %v3020_v52, %v2430_v56  ;;  %v3329_v59 = vpop.f32.mrb[39].mxu0 }
 0x94f   : > { %v2451_v60 = vadd.f32 %v2448_v50, %v2426_v25  ;;  %v2443_v61 = vmul.f32 0.044715, %v2431_v57  ;;  %v2440_v14 = vmul.f32 0.5, %v2431_v57 }
 0x950   : > { %v2435_v62 = vpop.f32.mrb[40].mxu0 }
 0x951   : > { %v2454_v63 = vmul.f32 0.7978846, %v2451_v60  ;;  %v2446_v39 = vmul.f32 %v2443_v61, %v2431_v57  ;;  %v2436_v1 = vadd.f32 %v3020_v52, %v2435_v62  ;;  %v3332_v2 = vpop.f32.mrb[41].mxu0 }
 0x952   : > { %v3026_v2 = vld [vmem:[%s4691_s30] ss:$0 sm:$0xff] (!%p3025_p1) }
 0x953   : > { %3668 = vtanh.f32 %v2454_v63  ;;  %v2444_v3 = vmul.f32 0.044715, %v2436_v1  ;;  %v2449_v4 = vmul.f32 %v2446_v39, %v2431_v57  ;;  %v2441_v21 = vmul.f32 0.5, %v2436_v1 }
 0x955   : > { %v2447_v5 = vmul.f32 %v2444_v3, %v2436_v1  ;;  %v2452_v6 = vadd.f32 %v2449_v4, %v2431_v57 }
 0x957   : > { %v2455_v7 = vmul.f32 0.7978846, %v2452_v6  ;;  %v2450_v58 = vmul.f32 %v2447_v5, %v2436_v1 }
 0x959   : > { %3670 = vtanh.f32 %v2455_v7  ;;  %v2453_v8 = vadd.f32 %v2450_v58, %v2436_v1  ;;  %v3027_v7 = vld [vmem:[%s4692_s26] ss:$0 sm:$0xff] (!%p3025_p1) }
 0x95b   : > { %v2456_v0 = vmul.f32 0.7978846, %v2453_v8 }
 0x95d   : > { %v3669_v9 = vpop.eup %3668  ;;  %3672 = vtanh.f32 %v2456_v0 }
 0x95e   : > { %v2460_v11 = vadd.f32 1.0, %v3669_v9 }
 0x960   : > { %v2463_v12 = vmul.f32 %v2460_v11, %v2439_v10 }
 0x962   : > { %3366 = vmatmul.mubr.f32.vlgmr.msra.gmra.mrb[24].mxu1 %v2463_v12 }
 0x963   : > { %v3671_v13 = vpop.eup %3670  ;;  %3368 = vmatprep.mubr.msk.f32.mxu1 %vm3778_vm5, %v3779_v42 }
 0x964   : > { %v2461_v17 = vadd.f32 1.0, %v3671_v13  ;;  %v3028_v13 = vld [vmem:[%s4693_s17] ss:$0 sm:$0xff] (!%p3025_p1) }
 0x966   : > { %v2464_v18 = vmul.f32 %v2461_v17, %v2440_v14 }
 0x967   : > { %v3673_v19 = vpop.eup %3672 }
 0x968   : > { %3369 = vmatmul.mubr.f32.gmra.mrb[26].mxu1 %v2464_v18  ;;  %v2462_v22 = vadd.f32 1.0, %v3673_v19 }
 0x969   : > { %3371 = vmatprep.mubr.msk.f32.mxu1 %vm3778_vm5, %v3779_v42 }
 0x96a   : > { %v2465_v16 = vmul.f32 %v2462_v22, %v2441_v21 }
 0x96c   : > { %3372 = vmatmul.mubr.f32.gmra.mrb[28].mxu1 %v2465_v16 }
 0xa35   : > { %v2555_v24 = vpop.f32.mrb[24].mxu1 }
 0xa36   : > { %v2556_v20 = vadd.f32 %v3024_v23, %v2555_v24  ;;  %v3367_v26 = vpop.f32.mrb[25].mxu1 }
 0xa38   : > { %v2569_v30 = vadd.f32 %v2556_v20, %v4418_v15 }
 0xa3a   : > { %2572 = vst.msk [vmem:[#allocation2] sm:$0xff] %vm1014_vm3, %v2569_v30 }
 0xa3b   : > { %v2560_v31 = vpop.f32.mrb[26].mxu1 }
 0xa3c   : > { %v2561_v33 = vadd.f32 %v3024_v23, %v2560_v31  ;;  %v3370_v34 = vpop.f32.mrb[27].mxu1 }
 0xa3e   : > { %v2570_v35 = vadd.f32 %v2561_v33, %v4424_v28  ;;  %2578 = sbr.rel (%p3025_p1) target bundleno = 3014 (0xbc6), region = 112 }
 0xa3f   : > { %v2565_v42 = vpop.f32.mrb[28].mxu1 }
 0xa40   : > { %2573 = vst.msk [vmem:[#allocation2 + $0x8] sm:$0xff] %vm1014_vm3, %v2570_v35  ;;  %v2566_v37 = vadd.f32 %v3024_v23, %v2565_v42  ;;  %v3373_v38 = vpop.f32.mrb[29].mxu1  ;;  %v2590_v15 = vmul.f32 (!%p3025_p1), %v2570_v35, %v2570_v35  ;;  %v2582_v43 = vsel (!%p3025_p1), %vm2581_vm13, %v2570_v35, 0.0 }
 0xa41   : > { %2583 = vadd.xlane.f32.xlu0 (!%p3025_p1), %v2582_v43 }
 0xa42   : > { %v2571_v40 = vadd.f32 %v2566_v37, %v4429_v36  ;;  %v2592_v29 = vsel (!%p3025_p1), %vm2581_vm13, %v2590_v15, 0.0  ;;  %v2628_v36 = vld [vmem:[%s4690_s23] sm:$0xff] (!%p3025_p1) }
 0xa43   : > { %2593 = vadd.xlane.f32.xlu1 (!%p3025_p1), %v2592_v29  ;;  %v3472_v47 = vpack.c.bf16 (!%p3025_p1), %v2629_v44, %v2628_v36 }
 0xa44   : > { %2574 = vst.msk [vmem:[#allocation2 + $0x10] sm:$0xf] %vm1021_vm4, %v2571_v40  ;;  %v2591_v41 = vmul.f32 (!%p3025_p1), %v2571_v40, %v2571_v40  ;;  %v2585_v28 = vsel (!%p3025_p1), %vm1021_vm4, %v2571_v40, 0.0 }
 0xa45   : > { %2586 = vadd.xlane.f32.xlu0 %v2585_v28  ;;  %3473 = vmatpush3.bf16.msra.mxu0 %v3472_v47 }
 0xa46   : > { %v2595_v32 = vsel %vm1021_vm4, %v2591_v41, 0.0  ;;  %3474 = vmatprep.subr.bf16.mxu0 %v3794_v46 }
 0xa47   : > { %2596 = vadd.xlane.f32.xlu1 %v2595_v32 }
 0xa49   : > { %3476 = vmatpush3.bf16.msra.mxu0 %v3475_v51 }
 0xace   : > { %v2584_v52 = vpop.xlane.xlu0 %2583 }
 0xacf   : > { %v2588_v53 = vmul.f32 0.03125, %v2584_v52 }
 0xad0   : > { %v2594_v25 = vpop.xlane.xlu1 %2593 }
 0xad1   : > { %v2598_v27 = vmul.f32 0.03125, %v2594_v25  ;;  %v2600_v54 = vmul.f32 %v2588_v53, %v2588_v53  ;;  %v2604_v39 = vsub.f32 %v2570_v35, %v2588_v53 }
 0xad2   : > { %v2587_v55 = vpop.xlane.xlu0 %2586 }
 0xad3   : > { %v2602_v56 = vsub.f32 %v2598_v27, %v2600_v54  ;;  %v2589_v50 = vmul.f32 0.03125, %v2587_v55 }
 0xad4   : > { %v2597_v57 = vpop.xlane.xlu1 %2596 }
 0xad5   : > { %v2599_v59 = vmul.f32 0.03125, %v2597_v57  ;;  %v2606_v60 = vadd.f32 1e-05, %v2602_v56  ;;  %v2601_v61 = vmul.f32 %v2589_v50, %v2589_v50  ;;  %v2605_v4 = vsub.f32 %v2571_v40, %v2589_v50 }
 0xad7   : > { %3677 = vrsqrt.f32 %v2606_v60  ;;  %v2603_v62 = vsub.f32 %v2599_v59, %v2601_v61 }
 0xad9   : > { %v2607_v63 = vadd.f32 1e-05, %v2603_v62 }
 0xadb   : > { %3679 = vrsqrt.f32 %v2607_v63 }
 0xae1   : > { %v3678_v1 = vpop.eup %3677 }
 0xae2   : > { %v2610_v3 = vmul.f32 %v3678_v1, %v2604_v39 }
 0xae4   : > { %v2618_v5 = vmul.f32 %v3026_v2, %v2610_v3 }
 0xae5   : > { %v3680_v6 = vpop.eup %3679 }
 0xae6   : > { %v2611_v58 = vmul.f32 %v3680_v6, %v2605_v4  ;;  %v2626_v0 = vadd.f32 %v3027_v7, %v2618_v5 }
 0xae8   : > { %v2619_v8 = vmul.f32 %v3026_v2, %v2611_v58  ;;  %v2641_v10 = vrot.slane %v2626_v0, 4 }
 0xaea   : > { %v2627_v9 = vadd.f32 %v3027_v7, %v2619_v8 }
 0xaec   : > { %v2642_v11 = vrot.slane %v2627_v9, 4 }
 0xaee   : > { %v2643_v12 = vsel %vm1333_vm10, %v2641_v10, %v2642_v11 }
 0xaef   : > { %3383 = vmatmul.mubr.msk.f32.vlgmr.msra.gmra.mrb[0].mxu0 %vm1014_vm3, %v2643_v12 }
 0xbc2   : > { %v2712_v14 = vpop.f32.mrb[0].mxu0 }
 0xbc3   : > { %v2713_v17 = vadd.f32 %v3028_v13, %v2712_v14  ;;  %v3384_v18 = vpop.f32.mrb[1].mxu0 }
 0xbc5   : > { %2716 = vst [vmem:[%s837_s16] sm:$0xff] %v2713_v17 }
 0xbc6 PF: > { %s4694_s15 = sld [smem:[#allocation10_spill]]  ;;  %s4695_s11 = sld [smem:[#allocation7_spill]] }
 0xbc7   : > { %s4697_s18 = sld [smem:[#allocation36_spill]]  ;;  %s2731_s7 = sshll.u32 %s837_s16, 4  ;;  %s2732_s7 = int_to_ptr.vmem [resolvable:$true] %s2731_s7 }
 0xbc8   : > { %s3681_s24 = scalar_lea.vmem %s2732_s7, 128  ;;  %s3797_s4 = smov [#allocation3]  }
 0xbc9   : > { %p3682_p2 = scmp.ne.s32.totalorder %s2732_s7, %s3681_s24  ;;  %s3685_s1 = sshll.u32 %s3797_s4, 4  ;;  %s3686_s1 = int_to_ptr.vmem [resolvable:$false] %s3685_s1 }
 0xbca   : > { %s3687_s0 = scalar_lea.vmem %s3686_s1, 256  ;;  %p3688_p6 = scmp.lt.s32.totalorder %s2732_s7, %s3686_s1 }
 0xbcb   : > { %p3683_p4 = pnand %p3682_p2, %p3957_p3  ;;  %p3689_p7 = scmp.lt.s32.totalorder %s3687_s0, %s3681_s24 }
 0xbcc   : > { %s3031_s13 = sshll.u32 %s4694_s15, 7  ;;  %s4698_s29 = sand.u32 1, %s4695_s11  }
 0xbcd   : > { %s4539_s21 = scalar_lea.hbm %s4697_s18, %s3031_s13  ;;  %s2718_s19 = scalar_lea.sflag [#allocation4], %s4698_s29 }
 0xbce   : > { %p3684_p5 = pneg %p3683_p4  ;;  %p3690_p8 = por %p3689_p7, %p3688_p6 }
 0xbd0   : > { %p3691_p10 = pnand %p3690_p8, %p3684_p5 }
 0xbd2   : > { %3694 = shalt.err (!%p3691_p10)
}
 0xbd3   : > { %s3695_s28 = scalar_lea.hbm %s4539_s21, 128  ;;  %s3699_s27 = scalar_lea.hbm %s4697_s18, 256 }
 0xbd4   : > { %p3696_p11 = scmp.ne.s32.totalorder %s4539_s21, %s3695_s28  ;;  %p3700_p0 = scmp.lt.u32.totalorder %s4539_s21, %s4697_s18 }
 0xbd5   : > { %p3701_p1 = scmp.lt.u32.totalorder %s3699_s27, %s3695_s28  ;;  %p3703_p4 = scmp.lt.u32.totalorder %s3695_s28, %s4539_s21 }
 0xbd6   : > { %p3697_p12 = pnand %p3696_p11, %p3957_p3 }
 0xbd7   : > { %p3702_p2 = por %p3701_p1, %p3700_p0 }
 0xbd8   : > { %p3698_p13 = pneg %p3697_p12 }
 0xbd9   : > { %p3704_p5 = por %p3703_p4, %p3702_p2 }
 0xbdb   : > { %p3705_p6 = pnand %p3704_p5, %p3698_p13 }
 0xbdd   : > { %3708 = shalt.err (!%p3705_p6)
}
 0xbde   : > { %3477 = dma.vmem_to_hbm [thread:$0]  (%p3957_p3), %s2732_s7, 128, %s4539_s21, %s2718_s19  }
 0xbdf PF: > { %s4699_s20 = sld [smem:[#allocation13_spill]]  ;;  %s4700_s3 = sld [smem:[#allocation6_spill]] }
 0xbe5   : > { %p3483_p7 = scmp.ge.s32.totalorder %s4699_s20, 2  ;;  %s2743_s15 = sand.u32 1, %s4700_s3  }
 0xbe6   : > { %s2744_s11 = scalar_lea.sflag [#allocation4], %s2743_s15 }
 0xbe7   : > { %p3480_p8 = pnand %p3483_p7, %p3967_p9 }
 0xbe9   : > { %3742 = dma.done.wait (!%p3480_p8), %s2744_s11, 128  }
 0xbea   : > { %3744 = vsyncadd (!%p3480_p8), %s2744_s11, 4294967168  ;;  %s34_s0 = sadd.s32 1, %s4699_s20   ;;  %s4702_s2 = sld [smem:[#allocation7_spill]] }
 0xbeb   : > { %p31_p10 = scmp.ge.s32.totalorder %s34_s0, 6   ;;  %s4703_s25 = sld [smem:[#allocation8_spill]] }
 0xbec   : > { %s4704_s26 = sld [smem:[#allocation18_spill]]  ;;  %s4705_s27 = sld [smem:[#allocation11_spill]] }
 0xbed   : > { %s4706_s3 = sld [smem:[#allocation12_spill]]  ;;  %s4707_s28 = sld [smem:[#allocation14_spill]] }
 0xbee   : > { %s4708_s29 = sld [smem:[#allocation16_spill]]  ;;  %33 = sbr.rel (!%p31_p10) target bundleno = 23 (0x17), region = 189 }
 0xbf5   :  { %2749 = vsyncpa [#allocation4], 1 }
 0xbf6   :  { %2751 = vsyncpa [#allocation4 + $0x1], 1 }

</bundles_post_ra>
